<compile_context>
chip_gen: v7x
topology: tpu7x:2x2x1
jax: 0.10.0
libtpu: 0.0.40
codegen_flags: <defaults>
</compile_context>

<pallas_src>
import jax
import jax.numpy as jnp
from jax.experimental import pallas as pl
from jax.experimental.pallas import tpu as pltpu


HIDDEN = 128
K = 5  # conv kernel size


# ---------------------------------------------------------------------------
# Kernel 1: fused CNN stack + hoisted LSTM input projection (one batch item)
# ---------------------------------------------------------------------------

def _cnn_proj_kernel(x_ref, w1_ref, b1_ref, w2_ref, b2_ref, wih_ref, bg_ref,
                     o_ref, y1s_ref):
    """x_ref:   (T+4, Cin)   time-padded input (padding=2 both ends)
       w1_ref:  (K, Cin, 32) conv1 taps     b1_ref: (1, 32)
       w2_ref:  (K, 32, 64)  conv2 taps     b2_ref: (1, 64)
       wih_ref: (64, 4H)     LSTM input weights (transposed)
       bg_ref:  (1, 4H)      b_ih + b_hh
       o_ref:   (T//4, 4H)   per-timestep pre-gates (input contribution)
       y1s_ref: (T//2+4, 32) VMEM scratch: pooled conv1 output, time-padded
    """
    Tp = x_ref.shape[0]
    T = Tp - 4
    P1 = T // 2            # length after pool1 (MaxPool floors, like PyTorch)
    P2 = P1 // 2           # length after pool2 == LSTM sequence length
    C1 = w1_ref.shape[2]
    C2 = w2_ref.shape[2]

    # ---- conv1 as K shifted matmuls, evaluated directly at the even / odd
    #      output phases so MaxPool1d(2) becomes a single jnp.maximum.
    acc_e = jnp.zeros((P1, C1), jnp.float32)
    acc_o = jnp.zeros((P1, C1), jnp.float32)
    for k in range(K):
        wk = w1_ref[k]                                         # (Cin, C1)
        acc_e += jnp.dot(x_ref[pl.ds(k, P1, stride=2), :], wk,
                         preferred_element_type=jnp.float32)
        acc_o += jnp.dot(x_ref[pl.ds(k + 1, P1, stride=2), :], wk,
                         preferred_element_type=jnp.float32)
    # max(relu(a+b1), relu(b+b1)) == relu(max(a,b) + b1)
    y1 = jnp.maximum(jnp.maximum(acc_e, acc_o) + b1_ref[...], 0.0)   # (P1, C1)

    # keep the 32-lane intermediate on-chip, time-padded by 2 for conv2
    y1s_ref[...] = jnp.zeros_like(y1s_ref)
    y1s_ref[pl.ds(2, P1), :] = y1

    # ---- conv2 + ReLU + pool2, same trick
    acc2_e = jnp.zeros((P2, C2), jnp.float32)
    acc2_o = jnp.zeros((P2, C2), jnp.float32)
    for k in range(K):
        wk = w2_ref[k]                                         # (C1, C2)
        acc2_e += jnp.dot(y1s_ref[pl.ds(k, P2, stride=2), :], wk,
                          preferred_element_type=jnp.float32)
        acc2_o += jnp.dot(y1s_ref[pl.ds(k + 1, P2, stride=2), :], wk,
                          preferred_element_type=jnp.float32)
    y2 = jnp.maximum(jnp.maximum(acc2_e, acc2_o) + b2_ref[...], 0.0)  # (P2, C2)

    # ---- hoisted LSTM input projection: ONE (P2, 64) x (64, 4H) matmul,
    #      biases folded in, so the recurrence only does h @ W_hh per step.
    o_ref[...] = (jnp.dot(y2, wih_ref[...], preferred_element_type=jnp.float32)
                  + bg_ref[...])


# ---------------------------------------------------------------------------
# Kernel 2: LSTM recurrence (grid over time) + fused Linear(128 -> 1)
# ---------------------------------------------------------------------------

def _lstm_kernel(xg_ref, whh_ref, wfc_ref, bfc_ref, o_ref, h_ref, c_ref):
    """xg_ref:  (Bp, 4H)  precomputed x_t @ W_ih + b_ih + b_hh for this step
       whh_ref: (H, 4H)   recurrent weights (transposed), resident
       wfc_ref: (1, H)    final Linear weight row
       bfc_ref: (1, 1)    final Linear bias
       o_ref:   (Bp, 1)   output, written on the last step only
       h_ref, c_ref: (Bp, H) f32 VMEM carries
    """
    t = pl.program_id(0)
    H = whh_ref.shape[0]

    @pl.when(t == 0)
    def _():
        h_ref[...] = jnp.zeros_like(h_ref)
        c_ref[...] = jnp.zeros_like(c_ref)

    gates = xg_ref[...] + jnp.dot(h_ref[...], whh_ref[...],
                                  preferred_element_type=jnp.float32)
    i = jax.nn.sigmoid(gates[:, 0:H])
    f = jax.nn.sigmoid(gates[:, H:2 * H])
    g = jnp.tanh(gates[:, 2 * H:3 * H])
    o = jax.nn.sigmoid(gates[:, 3 * H:4 * H])
    c = f * c_ref[...] + i * g
    h = o * jnp.tanh(c)
    h_ref[...] = h
    c_ref[...] = c

    @pl.when(t == pl.num_programs(0) - 1)
    def _():
        # Linear(128 -> 1) as VPU multiply + lane reduction (no N=1 matmul).
        o_ref[...] = (jnp.sum(h * wfc_ref[...], axis=1, keepdims=True)
                      + bfc_ref[...])


# ---------------------------------------------------------------------------
# Wrapper (only cheap layout plumbing stays in plain JAX)
# ---------------------------------------------------------------------------

def eeg_conv_bilstm_forward(x, p):
    """x: (B, in_channels, T) float32 -> (B, 1); matches the PyTorch module."""
    B, Cin, T = x.shape
    H = HIDDEN
    P1 = T // 2
    P2 = P1 // 2

    # NCL -> (B, T, Cin), pad time by 2 on both sides ('same' conv padding).
    x_pad = jnp.pad(jnp.transpose(x, (0, 2, 1)), ((0, 0), (2, 2), (0, 0)))

    w1 = jnp.transpose(p["w1"], (2, 1, 0))                     # (K, Cin, 32)
    w2 = jnp.transpose(p["w2"], (2, 1, 0))                     # (K, 32, 64)
    wih = jnp.transpose(p["w_ih"])                             # (64, 4H)
    whh = jnp.transpose(p["w_hh"])                             # (H, 4H)
    bg = (p["b_ih"] + p["b_hh"]).reshape(1, 4 * H)
    C1 = w1.shape[2]
    C2 = w2.shape[2]

    gates_x = pl.pallas_call(
        _cnn_proj_kernel,
        out_shape=jax.ShapeDtypeStruct((B, P2, 4 * H), jnp.float32),
        grid_spec=pltpu.PrefetchScalarGridSpec(
            num_scalar_prefetch=0,
            grid=(B,),
            in_specs=[
                pl.BlockSpec((None, T + 4, Cin), lambda b: (b, 0, 0)),   # x
                pl.BlockSpec((K, Cin, C1), lambda b: (0, 0, 0)),         # w1
                pl.BlockSpec((1, C1), lambda b: (0, 0)),                 # b1
                pl.BlockSpec((K, C1, C2), lambda b: (0, 0, 0)),          # w2
                pl.BlockSpec((1, C2), lambda b: (0, 0)),                 # b2
                pl.BlockSpec((C2, 4 * H), lambda b: (0, 0)),             # W_ih^T
                pl.BlockSpec((1, 4 * H), lambda b: (0, 0)),              # biases
            ],
            out_specs=pl.BlockSpec((None, P2, 4 * H), lambda b: (b, 0, 0)),
            scratch_shapes=[pltpu.VMEM((P1 + 4, C1), jnp.float32)]),
        compiler_params=pltpu.CompilerParams(
            dimension_semantics=("parallel",),
            vmem_limit_bytes=32 * 1024 * 1024),
    )(x_pad, w1, p["b1"].reshape(1, C1), w2, p["b2"].reshape(1, C2), wih, bg)

    # Time-major pre-gates; pad batch to a full sublane group (8) so the
    # recurrence vregs are not 75% dead.  Padded rows stay zero / are dropped.
    Bp = max(8, ((B + 7) // 8) * 8)
    xg = jnp.transpose(gates_x, (1, 0, 2))                     # (P2, B, 4H)
    xg = jnp.pad(xg, ((0, 0), (0, Bp - B), (0, 0)))            # (P2, Bp, 4H)

    out_p = pl.pallas_call(
        _lstm_kernel,
        out_shape=jax.ShapeDtypeStruct((Bp, 1), jnp.float32),
        grid_spec=pltpu.PrefetchScalarGridSpec(
            num_scalar_prefetch=0,
            grid=(P2,),
            in_specs=[
                pl.BlockSpec((None, Bp, 4 * H), lambda t: (t, 0, 0)),    # x-gates
                pl.BlockSpec((H, 4 * H), lambda t: (0, 0)),              # W_hh^T
                pl.BlockSpec((1, H), lambda t: (0, 0)),                  # w_fc
                pl.BlockSpec((1, 1), lambda t: (0, 0)),                  # b_fc
            ],
            out_specs=pl.BlockSpec((Bp, 1), lambda t: (0, 0)),
            scratch_shapes=[pltpu.VMEM((Bp, H), jnp.float32),            # h
                            pltpu.VMEM((Bp, H), jnp.float32)]),          # c
        compiler_params=pltpu.CompilerParams(
            dimension_semantics=("arbitrary",),
            vmem_limit_bytes=32 * 1024 * 1024),
    )(xg, whh, p["w_fc"], p["b_fc"].reshape(1, 1))

    return out_p[:B]


# ---------------------------------------------------------------------------
# Pure-JAX reference (for correctness check)
# ---------------------------------------------------------------------------

def _reference_forward(x, p):
    def conv1d(x, w, b):
        y = jax.lax.conv_general_dilated(
            x, w, window_strides=(1,), padding=((2, 2),),
            dimension_numbers=("NCH", "OIH", "NCH"))
        return y + b[None, :, None]

    def pool2(y):
        B, C, T = y.shape
        return jnp.max(y.reshape(B, C, T // 2, 2), axis=-1)

    y = pool2(jnp.maximum(conv1d(x, p["w1"], p["b1"]), 0.0))
    y = pool2(jnp.maximum(conv1d(y, p["w2"], p["b2"]), 0.0))
    seq = jnp.transpose(y, (0, 2, 1))                          # (B, T', 64)
    H = HIDDEN
    h = jnp.zeros((x.shape[0], H), jnp.float32)
    c = jnp.zeros_like(h)
    for t in range(seq.shape[1]):
        gates = seq[:, t] @ p["w_ih"].T + h @ p["w_hh"].T + p["b_ih"] + p["b_hh"]
        i = jax.nn.sigmoid(gates[:, :H])
        f = jax.nn.sigmoid(gates[:, H:2 * H])
        g = jnp.tanh(gates[:, 2 * H:3 * H])
        o = jax.nn.sigmoid(gates[:, 3 * H:4 * H])
        c = f * c + i * g
        h = o * jnp.tanh(c)
    return h @ p["w_fc"].T + p["b_fc"]


# ---------------------------------------------------------------------------

def _init_params(key, in_channels, hidden=HIDDEN):
    ks = jax.random.split(key, 10)
    s = 0.1
    return {
        "w1": s * jax.random.normal(ks[0], (32, in_channels, 5), jnp.float32),
        "b1": s * jax.random.normal(ks[1], (32,), jnp.float32),
        "w2": s * jax.random.normal(ks[2], (64, 32, 5), jnp.float32),
        "b2": s * jax.random.normal(ks[3], (64,), jnp.float32),
        "w_ih": s * jax.random.normal(ks[4], (4 * hidden, 64), jnp.float32),
        "w_hh": s * jax.random.normal(ks[5], (4 * hidden, hidden), jnp.float32),
        "b_ih": s * jax.random.normal(ks[6], (4 * hidden,), jnp.float32),
        "b_hh": s * jax.random.normal(ks[7], (4 * hidden,), jnp.float32),
        "w_fc": s * jax.random.normal(ks[8], (1, hidden), jnp.float32),
        "b_fc": s * jax.random.normal(ks[9], (1,), jnp.float32),
    }


if __name__ == "__main__":
    key = jax.random.PRNGKey(0)
    kx, kp = jax.random.split(key)
    B, C_in, T = 2, 4, 32          # pooled length 16 -> LSTM seq length 8
    x = jax.random.normal(kx, (B, C_in, T), jnp.float32)
    params = _init_params(kp, C_in)

    fwd = jax.jit(eeg_conv_bilstm_forward)
    out = jax.block_until_ready(fwd(x, params))
    ref = jax.block_until_ready(_reference_forward(x, params))

    assert out.shape == (B, 1), out.shape
    assert jnp.allclose(out, ref, rtol=1e-3, atol=1e-3), (out, ref)
    print("KERNEL_OK")
</pallas_src>

<mosaic_0001>
module attributes {stable_mosaic.version = 11 : i64} {
  func.func @_cnn_proj_kernel(%arg0: i32, %arg1: memref<1x36x4xf32, #tpu.memory_space<vmem>>, %arg2: memref<5x4x32xf32, #tpu.memory_space<vmem>>, %arg3: memref<1x32xf32, #tpu.memory_space<vmem>>, %arg4: memref<5x32x64xf32, #tpu.memory_space<vmem>>, %arg5: memref<1x64xf32, #tpu.memory_space<vmem>>, %arg6: memref<64x512xf32, #tpu.memory_space<vmem>>, %arg7: memref<1x512xf32, #tpu.memory_space<vmem>>, %arg8: memref<1x8x512xf32, #tpu.memory_space<vmem>>, %arg9: memref<20x32xf32, #tpu.memory_space<vmem>>) attributes {dimension_semantics = [#tpu.dimension_semantics<parallel>], iteration_bounds = array<i64: 2>, scalar_prefetch = 0 : i64, scratch_operands = 1 : i64, tpu.core_type = #tpu.core_type<tc>, window_params = [{transform_indices = @transform_0, window_bounds = array<i64: 1, 36, 4>}, {pipeline_mode = #tpu.pipeline_mode<synchronous>, transform_indices = @transform_1, window_bounds = array<i64: 5, 4, 32>}, {pipeline_mode = #tpu.pipeline_mode<synchronous>, transform_indices = @transform_2, window_bounds = array<i64: 1, 32>}, {pipeline_mode = #tpu.pipeline_mode<synchronous>, transform_indices = @transform_3, window_bounds = array<i64: 5, 32, 64>}, {pipeline_mode = #tpu.pipeline_mode<synchronous>, transform_indices = @transform_4, window_bounds = array<i64: 1, 64>}, {pipeline_mode = #tpu.pipeline_mode<synchronous>, transform_indices = @transform_5, window_bounds = array<i64: 64, 512>}, {pipeline_mode = #tpu.pipeline_mode<synchronous>, transform_indices = @transform_6, window_bounds = array<i64: 1, 512>}, {transform_indices = @transform_7, window_bounds = array<i64: 1, 8, 512>}]} {
    %cst = arith.constant 0.000000e+00 : f32
    %0 = vector.broadcast %cst : f32 to vector<16x32xf32>
    %cst_0 = arith.constant 0.000000e+00 : f32
    %1 = vector.broadcast %cst_0 : f32 to vector<16x32xf32>
    %c0 = arith.constant 0 : index
    %c0_1 = arith.constant 0 : index
    %c0_2 = arith.constant 0 : index
    %2 = vector.load %arg2[%c0, %c0_1, %c0_2] : memref<5x4x32xf32, #tpu.memory_space<vmem>>, vector<1x4x32xf32>
    %3 = vector.shape_cast %2 : vector<1x4x32xf32> to vector<4x32xf32>
    %c0_3 = arith.constant 0 : index
    %c0_4 = arith.constant 0 : index
    %c0_5 = arith.constant 0 : index
    %4 = tpu.strided_load %arg1[%c0_3, %c0_4, %c0_5] {strides = array<i32: 1, 2, 1>} : memref<1x36x4xf32, #tpu.memory_space<vmem>>, vector<1x16x4xf32>
    %5 = vector.shape_cast %4 : vector<1x16x4xf32> to vector<16x4xf32>
    %cst_6 = arith.constant dense<0.000000e+00> : vector<16x32xf32>
    %6 = tpu.matmul %5, %3, %cst_6 {dimension_numbers = #tpu.dot_dimension_numbers<[1], [0], [0], [1], [0, 0, 1, 1], [], []>} : vector<16x4xf32>, vector<4x32xf32>, vector<16x32xf32> -> vector<16x32xf32>
    %7 = arith.addf %0, %6 : vector<16x32xf32>
    %c0_7 = arith.constant 0 : index
    %c1 = arith.constant 1 : index
    %c0_8 = arith.constant 0 : index
    %8 = tpu.strided_load %arg1[%c0_7, %c1, %c0_8] {strides = array<i32: 1, 2, 1>} : memref<1x36x4xf32, #tpu.memory_space<vmem>>, vector<1x16x4xf32>
    %9 = vector.shape_cast %8 : vector<1x16x4xf32> to vector<16x4xf32>
    %cst_9 = arith.constant dense<0.000000e+00> : vector<16x32xf32>
    %10 = tpu.matmul %9, %3, %cst_9 {dimension_numbers = #tpu.dot_dimension_numbers<[1], [0], [0], [1], [0, 0, 1, 1], [], []>} : vector<16x4xf32>, vector<4x32xf32>, vector<16x32xf32> -> vector<16x32xf32>
    %11 = arith.addf %1, %10 : vector<16x32xf32>
    %c1_10 = arith.constant 1 : index
    %c0_11 = arith.constant 0 : index
    %c0_12 = arith.constant 0 : index
    %12 = vector.load %arg2[%c1_10, %c0_11, %c0_12] : memref<5x4x32xf32, #tpu.memory_space<vmem>>, vector<1x4x32xf32>
    %13 = vector.shape_cast %12 : vector<1x4x32xf32> to vector<4x32xf32>
    %c0_13 = arith.constant 0 : index
    %c1_14 = arith.constant 1 : index
    %c0_15 = arith.constant 0 : index
    %14 = tpu.strided_load %arg1[%c0_13, %c1_14, %c0_15] {strides = array<i32: 1, 2, 1>} : memref<1x36x4xf32, #tpu.memory_space<vmem>>, vector<1x16x4xf32>
    %15 = vector.shape_cast %14 : vector<1x16x4xf32> to vector<16x4xf32>
    %cst_16 = arith.constant dense<0.000000e+00> : vector<16x32xf32>
    %16 = tpu.matmul %15, %13, %cst_16 {dimension_numbers = #tpu.dot_dimension_numbers<[1], [0], [0], [1], [0, 0, 1, 1], [], []>} : vector<16x4xf32>, vector<4x32xf32>, vector<16x32xf32> -> vector<16x32xf32>
    %17 = arith.addf %7, %16 : vector<16x32xf32>
    %c0_17 = arith.constant 0 : index
    %c2 = arith.constant 2 : index
    %c0_18 = arith.constant 0 : index
    %18 = tpu.strided_load %arg1[%c0_17, %c2, %c0_18] {strides = array<i32: 1, 2, 1>} : memref<1x36x4xf32, #tpu.memory_space<vmem>>, vector<1x16x4xf32>
    %19 = vector.shape_cast %18 : vector<1x16x4xf32> to vector<16x4xf32>
    %cst_19 = arith.constant dense<0.000000e+00> : vector<16x32xf32>
    %20 = tpu.matmul %19, %13, %cst_19 {dimension_numbers = #tpu.dot_dimension_numbers<[1], [0], [0], [1], [0, 0, 1, 1], [], []>} : vector<16x4xf32>, vector<4x32xf32>, vector<16x32xf32> -> vector<16x32xf32>
    %21 = arith.addf %11, %20 : vector<16x32xf32>
    %c2_20 = arith.constant 2 : index
    %c0_21 = arith.constant 0 : index
    %c0_22 = arith.constant 0 : index
    %22 = vector.load %arg2[%c2_20, %c0_21, %c0_22] : memref<5x4x32xf32, #tpu.memory_space<vmem>>, vector<1x4x32xf32>
    %23 = vector.shape_cast %22 : vector<1x4x32xf32> to vector<4x32xf32>
    %c0_23 = arith.constant 0 : index
    %c2_24 = arith.constant 2 : index
    %c0_25 = arith.constant 0 : index
    %24 = tpu.strided_load %arg1[%c0_23, %c2_24, %c0_25] {strides = array<i32: 1, 2, 1>} : memref<1x36x4xf32, #tpu.memory_space<vmem>>, vector<1x16x4xf32>
    %25 = vector.shape_cast %24 : vector<1x16x4xf32> to vector<16x4xf32>
    %cst_26 = arith.constant dense<0.000000e+00> : vector<16x32xf32>
    %26 = tpu.matmul %25, %23, %cst_26 {dimension_numbers = #tpu.dot_dimension_numbers<[1], [0], [0], [1], [0, 0, 1, 1], [], []>} : vector<16x4xf32>, vector<4x32xf32>, vector<16x32xf32> -> vector<16x32xf32>
    %27 = arith.addf %17, %26 : vector<16x32xf32>
    %c0_27 = arith.constant 0 : index
    %c3 = arith.constant 3 : index
    %c0_28 = arith.constant 0 : index
    %28 = tpu.strided_load %arg1[%c0_27, %c3, %c0_28] {strides = array<i32: 1, 2, 1>} : memref<1x36x4xf32, #tpu.memory_space<vmem>>, vector<1x16x4xf32>
    %29 = vector.shape_cast %28 : vector<1x16x4xf32> to vector<16x4xf32>
    %cst_29 = arith.constant dense<0.000000e+00> : vector<16x32xf32>
    %30 = tpu.matmul %29, %23, %cst_29 {dimension_numbers = #tpu.dot_dimension_numbers<[1], [0], [0], [1], [0, 0, 1, 1], [], []>} : vector<16x4xf32>, vector<4x32xf32>, vector<16x32xf32> -> vector<16x32xf32>
    %31 = arith.addf %21, %30 : vector<16x32xf32>
    %c3_30 = arith.constant 3 : index
    %c0_31 = arith.constant 0 : index
    %c0_32 = arith.constant 0 : index
    %32 = vector.load %arg2[%c3_30, %c0_31, %c0_32] : memref<5x4x32xf32, #tpu.memory_space<vmem>>, vector<1x4x32xf32>
    %33 = vector.shape_cast %32 : vector<1x4x32xf32> to vector<4x32xf32>
    %c0_33 = arith.constant 0 : index
    %c3_34 = arith.constant 3 : index
    %c0_35 = arith.constant 0 : index
    %34 = tpu.strided_load %arg1[%c0_33, %c3_34, %c0_35] {strides = array<i32: 1, 2, 1>} : memref<1x36x4xf32, #tpu.memory_space<vmem>>, vector<1x16x4xf32>
    %35 = vector.shape_cast %34 : vector<1x16x4xf32> to vector<16x4xf32>
    %cst_36 = arith.constant dense<0.000000e+00> : vector<16x32xf32>
    %36 = tpu.matmul %35, %33, %cst_36 {dimension_numbers = #tpu.dot_dimension_numbers<[1], [0], [0], [1], [0, 0, 1, 1], [], []>} : vector<16x4xf32>, vector<4x32xf32>, vector<16x32xf32> -> vector<16x32xf32>
    %37 = arith.addf %27, %36 : vector<16x32xf32>
    %c0_37 = arith.constant 0 : index
    %c4 = arith.constant 4 : index
    %c0_38 = arith.constant 0 : index
    %38 = tpu.strided_load %arg1[%c0_37, %c4, %c0_38] {strides = array<i32: 1, 2, 1>} : memref<1x36x4xf32, #tpu.memory_space<vmem>>, vector<1x16x4xf32>
    %39 = vector.shape_cast %38 : vector<1x16x4xf32> to vector<16x4xf32>
    %cst_39 = arith.constant dense<0.000000e+00> : vector<16x32xf32>
    %40 = tpu.matmul %39, %33, %cst_39 {dimension_numbers = #tpu.dot_dimension_numbers<[1], [0], [0], [1], [0, 0, 1, 1], [], []>} : vector<16x4xf32>, vector<4x32xf32>, vector<16x32xf32> -> vector<16x32xf32>
    %41 = arith.addf %31, %40 : vector<16x32xf32>
    %c4_40 = arith.constant 4 : index
    %c0_41 = arith.constant 0 : index
    %c0_42 = arith.constant 0 : index
    %42 = vector.load %arg2[%c4_40, %c0_41, %c0_42] : memref<5x4x32xf32, #tpu.memory_space<vmem>>, vector<1x4x32xf32>
    %43 = vector.shape_cast %42 : vector<1x4x32xf32> to vector<4x32xf32>
    %c0_43 = arith.constant 0 : index
    %c4_44 = arith.constant 4 : index
    %c0_45 = arith.constant 0 : index
    %44 = tpu.strided_load %arg1[%c0_43, %c4_44, %c0_45] {strides = array<i32: 1, 2, 1>} : memref<1x36x4xf32, #tpu.memory_space<vmem>>, vector<1x16x4xf32>
    %45 = vector.shape_cast %44 : vector<1x16x4xf32> to vector<16x4xf32>
    %cst_46 = arith.constant dense<0.000000e+00> : vector<16x32xf32>
    %46 = tpu.matmul %45, %43, %cst_46 {dimension_numbers = #tpu.dot_dimension_numbers<[1], [0], [0], [1], [0, 0, 1, 1], [], []>} : vector<16x4xf32>, vector<4x32xf32>, vector<16x32xf32> -> vector<16x32xf32>
    %47 = arith.addf %37, %46 : vector<16x32xf32>
    %c0_47 = arith.constant 0 : index
    %c5 = arith.constant 5 : index
    %c0_48 = arith.constant 0 : index
    %48 = tpu.strided_load %arg1[%c0_47, %c5, %c0_48] {strides = array<i32: 1, 2, 1>} : memref<1x36x4xf32, #tpu.memory_space<vmem>>, vector<1x16x4xf32>
    %49 = vector.shape_cast %48 : vector<1x16x4xf32> to vector<16x4xf32>
    %cst_49 = arith.constant dense<0.000000e+00> : vector<16x32xf32>
    %50 = tpu.matmul %49, %43, %cst_49 {dimension_numbers = #tpu.dot_dimension_numbers<[1], [0], [0], [1], [0, 0, 1, 1], [], []>} : vector<16x4xf32>, vector<4x32xf32>, vector<16x32xf32> -> vector<16x32xf32>
    %51 = arith.addf %41, %50 : vector<16x32xf32>
    %52 = arith.maximumf %47, %51 : vector<16x32xf32>
    %c0_50 = arith.constant 0 : index
    %c0_51 = arith.constant 0 : index
    %53 = vector.load %arg3[%c0_50, %c0_51] : memref<1x32xf32, #tpu.memory_space<vmem>>, vector<1x32xf32>
    %54 = vector.broadcast %53 : vector<1x32xf32> to vector<16x32xf32>
    %55 = arith.addf %52, %54 : vector<16x32xf32>
    %cst_52 = arith.constant 0.000000e+00 : f32
    %56 = vector.broadcast %cst_52 : f32 to vector<16x32xf32>
    %57 = arith.maximumf %55, %56 : vector<16x32xf32>
    %cst_53 = arith.constant 0.000000e+00 : f32
    %58 = vector.broadcast %cst_53 : f32 to vector<20x32xf32>
    %c0_54 = arith.constant 0 : index
    %c0_55 = arith.constant 0 : index
    %59 = vector.load %arg9[%c0_54, %c0_55] : memref<20x32xf32, #tpu.memory_space<vmem>>, vector<20x32xf32>
    tpu.vector_store %arg9[%c0_54, %c0_55], %58 {strides = array<i32>} : memref<20x32xf32, #tpu.memory_space<vmem>>, vector<20x32xf32>,
    %c2_56 = arith.constant 2 : index
    %c0_57 = arith.constant 0 : index
    %60 = vector.load %arg9[%c2_56, %c0_57] : memref<20x32xf32, #tpu.memory_space<vmem>>, vector<16x32xf32>
    tpu.vector_store %arg9[%c2_56, %c0_57], %57 {strides = array<i32>} : memref<20x32xf32, #tpu.memory_space<vmem>>, vector<16x32xf32>,
    %cst_58 = arith.constant 0.000000e+00 : f32
    %61 = vector.broadcast %cst_58 : f32 to vector<8x64xf32>
    %cst_59 = arith.constant 0.000000e+00 : f32
    %62 = vector.broadcast %cst_59 : f32 to vector<8x64xf32>
    %c0_60 = arith.constant 0 : index
    %c0_61 = arith.constant 0 : index
    %c0_62 = arith.constant 0 : index
    %63 = vector.load %arg4[%c0_60, %c0_61, %c0_62] : memref<5x32x64xf32, #tpu.memory_space<vmem>>, vector<1x32x64xf32>
    %64 = vector.shape_cast %63 : vector<1x32x64xf32> to vector<32x64xf32>
    %c0_63 = arith.constant 0 : index
    %c0_64 = arith.constant 0 : index
    %65 = tpu.strided_load %arg9[%c0_63, %c0_64] {strides = array<i32: 2, 1>} : memref<20x32xf32, #tpu.memory_space<vmem>>, vector<8x32xf32>
    %cst_65 = arith.constant dense<0.000000e+00> : vector<8x64xf32>
    %66 = tpu.matmul %65, %64, %cst_65 {dimension_numbers = #tpu.dot_dimension_numbers<[1], [0], [0], [1], [0, 0, 1, 1], [], []>} : vector<8x32xf32>, vector<32x64xf32>, vector<8x64xf32> -> vector<8x64xf32>
    %67 = arith.addf %61, %66 : vector<8x64xf32>
    %c1_66 = arith.constant 1 : index
    %c0_67 = arith.constant 0 : index
    %68 = tpu.strided_load %arg9[%c1_66, %c0_67] {strides = array<i32: 2, 1>} : memref<20x32xf32, #tpu.memory_space<vmem>>, vector<8x32xf32>
    %cst_68 = arith.constant dense<0.000000e+00> : vector<8x64xf32>
    %69 = tpu.matmul %68, %64, %cst_68 {dimension_numbers = #tpu.dot_dimension_numbers<[1], [0], [0], [1], [0, 0, 1, 1], [], []>} : vector<8x32xf32>, vector<32x64xf32>, vector<8x64xf32> -> vector<8x64xf32>
    %70 = arith.addf %62, %69 : vector<8x64xf32>
    %c1_69 = arith.constant 1 : index
    %c0_70 = arith.constant 0 : index
    %c0_71 = arith.constant 0 : index
    %71 = vector.load %arg4[%c1_69, %c0_70, %c0_71] : memref<5x32x64xf32, #tpu.memory_space<vmem>>, vector<1x32x64xf32>
    %72 = vector.shape_cast %71 : vector<1x32x64xf32> to vector<32x64xf32>
    %c1_72 = arith.constant 1 : index
    %c0_73 = arith.constant 0 : index
    %73 = tpu.strided_load %arg9[%c1_72, %c0_73] {strides = array<i32: 2, 1>} : memref<20x32xf32, #tpu.memory_space<vmem>>, vector<8x32xf32>
    %cst_74 = arith.constant dense<0.000000e+00> : vector<8x64xf32>
    %74 = tpu.matmul %73, %72, %cst_74 {dimension_numbers = #tpu.dot_dimension_numbers<[1], [0], [0], [1], [0, 0, 1, 1], [], []>} : vector<8x32xf32>, vector<32x64xf32>, vector<8x64xf32> -> vector<8x64xf32>
    %75 = arith.addf %67, %74 : vector<8x64xf32>
    %c2_75 = arith.constant 2 : index
    %c0_76 = arith.constant 0 : index
    %76 = tpu.strided_load %arg9[%c2_75, %c0_76] {strides = array<i32: 2, 1>} : memref<20x32xf32, #tpu.memory_space<vmem>>, vector<8x32xf32>
    %cst_77 = arith.constant dense<0.000000e+00> : vector<8x64xf32>
    %77 = tpu.matmul %76, %72, %cst_77 {dimension_numbers = #tpu.dot_dimension_numbers<[1], [0], [0], [1], [0, 0, 1, 1], [], []>} : vector<8x32xf32>, vector<32x64xf32>, vector<8x64xf32> -> vector<8x64xf32>
    %78 = arith.addf %70, %77 : vector<8x64xf32>
    %c2_78 = arith.constant 2 : index
    %c0_79 = arith.constant 0 : index
    %c0_80 = arith.constant 0 : index
    %79 = vector.load %arg4[%c2_78, %c0_79, %c0_80] : memref<5x32x64xf32, #tpu.memory_space<vmem>>, vector<1x32x64xf32>
    %80 = vector.shape_cast %79 : vector<1x32x64xf32> to vector<32x64xf32>
    %c2_81 = arith.constant 2 : index
    %c0_82 = arith.constant 0 : index
    %81 = tpu.strided_load %arg9[%c2_81, %c0_82] {strides = array<i32: 2, 1>} : memref<20x32xf32, #tpu.memory_space<vmem>>, vector<8x32xf32>
    %cst_83 = arith.constant dense<0.000000e+00> : vector<8x64xf32>
    %82 = tpu.matmul %81, %80, %cst_83 {dimension_numbers = #tpu.dot_dimension_numbers<[1], [0], [0], [1], [0, 0, 1, 1], [], []>} : vector<8x32xf32>, vector<32x64xf32>, vector<8x64xf32> -> vector<8x64xf32>
    %83 = arith.addf %75, %82 : vector<8x64xf32>
    %c3_84 = arith.constant 3 : index
    %c0_85 = arith.constant 0 : index
    %84 = tpu.strided_load %arg9[%c3_84, %c0_85] {strides = array<i32: 2, 1>} : memref<20x32xf32, #tpu.memory_space<vmem>>, vector<8x32xf32>
    %cst_86 = arith.constant dense<0.000000e+00> : vector<8x64xf32>
    %85 = tpu.matmul %84, %80, %cst_86 {dimension_numbers = #tpu.dot_dimension_numbers<[1], [0], [0], [1], [0, 0, 1, 1], [], []>} : vector<8x32xf32>, vector<32x64xf32>, vector<8x64xf32> -> vector<8x64xf32>
    %86 = arith.addf %78, %85 : vector<8x64xf32>
    %c3_87 = arith.constant 3 : index
    %c0_88 = arith.constant 0 : index
    %c0_89 = arith.constant 0 : index
    %87 = vector.load %arg4[%c3_87, %c0_88, %c0_89] : memref<5x32x64xf32, #tpu.memory_space<vmem>>, vector<1x32x64xf32>
    %88 = vector.shape_cast %87 : vector<1x32x64xf32> to vector<32x64xf32>
    %c3_90 = arith.constant 3 : index
    %c0_91 = arith.constant 0 : index
    %89 = tpu.strided_load %arg9[%c3_90, %c0_91] {strides = array<i32: 2, 1>} : memref<20x32xf32, #tpu.memory_space<vmem>>, vector<8x32xf32>
    %cst_92 = arith.constant dense<0.000000e+00> : vector<8x64xf32>
    %90 = tpu.matmul %89, %88, %cst_92 {dimension_numbers = #tpu.dot_dimension_numbers<[1], [0], [0], [1], [0, 0, 1, 1], [], []>} : vector<8x32xf32>, vector<32x64xf32>, vector<8x64xf32> -> vector<8x64xf32>
    %91 = arith.addf %83, %90 : vector<8x64xf32>
    %c4_93 = arith.constant 4 : index
    %c0_94 = arith.constant 0 : index
    %92 = tpu.strided_load %arg9[%c4_93, %c0_94] {strides = array<i32: 2, 1>} : memref<20x32xf32, #tpu.memory_space<vmem>>, vector<8x32xf32>
    %cst_95 = arith.constant dense<0.000000e+00> : vector<8x64xf32>
    %93 = tpu.matmul %92, %88, %cst_95 {dimension_numbers = #tpu.dot_dimension_numbers<[1], [0], [0], [1], [0, 0, 1, 1], [], []>} : vector<8x32xf32>, vector<32x64xf32>, vector<8x64xf32> -> vector<8x64xf32>
    %94 = arith.addf %86, %93 : vector<8x64xf32>
    %c4_96 = arith.constant 4 : index
    %c0_97 = arith.constant 0 : index
    %c0_98 = arith.constant 0 : index
    %95 = vector.load %arg4[%c4_96, %c0_97, %c0_98] : memref<5x32x64xf32, #tpu.memory_space<vmem>>, vector<1x32x64xf32>
    %96 = vector.shape_cast %95 : vector<1x32x64xf32> to vector<32x64xf32>
    %c4_99 = arith.constant 4 : index
    %c0_100 = arith.constant 0 : index
    %97 = tpu.strided_load %arg9[%c4_99, %c0_100] {strides = array<i32: 2, 1>} : memref<20x32xf32, #tpu.memory_space<vmem>>, vector<8x32xf32>
    %cst_101 = arith.constant dense<0.000000e+00> : vector<8x64xf32>
    %98 = tpu.matmul %97, %96, %cst_101 {dimension_numbers = #tpu.dot_dimension_numbers<[1], [0], [0], [1], [0, 0, 1, 1], [], []>} : vector<8x32xf32>, vector<32x64xf32>, vector<8x64xf32> -> vector<8x64xf32>
    %99 = arith.addf %91, %98 : vector<8x64xf32>
    %c5_102 = arith.constant 5 : index
    %c0_103 = arith.constant 0 : index
    %100 = tpu.strided_load %arg9[%c5_102, %c0_103] {strides = array<i32: 2, 1>} : memref<20x32xf32, #tpu.memory_space<vmem>>, vector<8x32xf32>
    %cst_104 = arith.constant dense<0.000000e+00> : vector<8x64xf32>
    %101 = tpu.matmul %100, %96, %cst_104 {dimension_numbers = #tpu.dot_dimension_numbers<[1], [0], [0], [1], [0, 0, 1, 1], [], []>} : vector<8x32xf32>, vector<32x64xf32>, vector<8x64xf32> -> vector<8x64xf32>
    %102 = arith.addf %94, %101 : vector<8x64xf32>
    %103 = arith.maximumf %99, %102 : vector<8x64xf32>
    %c0_105 = arith.constant 0 : index
    %c0_106 = arith.constant 0 : index
    %104 = vector.load %arg5[%c0_105, %c0_106] : memref<1x64xf32, #tpu.memory_space<vmem>>, vector<1x64xf32>
    %105 = vector.broadcast %104 : vector<1x64xf32> to vector<8x64xf32>
    %106 = arith.addf %103, %105 : vector<8x64xf32>
    %cst_107 = arith.constant 0.000000e+00 : f32
    %107 = vector.broadcast %cst_107 : f32 to vector<8x64xf32>
    %108 = arith.maximumf %106, %107 : vector<8x64xf32>
    %c0_108 = arith.constant 0 : index
    %c0_109 = arith.constant 0 : index
    %109 = vector.load %arg6[%c0_108, %c0_109] : memref<64x512xf32, #tpu.memory_space<vmem>>, vector<64x512xf32>
    %cst_110 = arith.constant dense<0.000000e+00> : vector<8x512xf32>
    %110 = tpu.matmul %108, %109, %cst_110 {dimension_numbers = #tpu.dot_dimension_numbers<[1], [0], [0], [1], [0, 0, 1, 1], [], []>} : vector<8x64xf32>, vector<64x512xf32>, vector<8x512xf32> -> vector<8x512xf32>
    %c0_111 = arith.constant 0 : index
    %c0_112 = arith.constant 0 : index
    %111 = vector.load %arg7[%c0_111, %c0_112] : memref<1x512xf32, #tpu.memory_space<vmem>>, vector<1x512xf32>
    %112 = vector.broadcast %111 : vector<1x512xf32> to vector<8x512xf32>
    %113 = arith.addf %110, %112 : vector<8x512xf32>
    %c0_113 = arith.constant 0 : index
    %c0_114 = arith.constant 0 : index
    %c0_115 = arith.constant 0 : index
    %114 = vector.load %arg8[%c0_113, %c0_114, %c0_115] : memref<1x8x512xf32, #tpu.memory_space<vmem>>, vector<1x8x512xf32>
    %115 = vector.shape_cast %114 : vector<1x8x512xf32> to vector<8x512xf32>
    %116 = vector.shape_cast %113 : vector<8x512xf32> to vector<1x8x512xf32>
    tpu.vector_store %arg8[%c0_113, %c0_114, %c0_115], %116 {strides = array<i32>} : memref<1x8x512xf32, #tpu.memory_space<vmem>>, vector<1x8x512xf32>,
    return
  }
  func.func @transform_0(%arg0: i32) -> (i32, i32, i32) {
    %c0_i32 = arith.constant 0 : i32
    %c0_i32_0 = arith.constant 0 : i32
    %c0_i32_1 = arith.constant 0 : i32
    return %arg0, %c0_i32, %c0_i32_0 : i32, i32, i32
  }
  func.func @transform_1(%arg0: i32) -> (i32, i32, i32) {
    %c0_i32 = arith.constant 0 : i32
    %c0_i32_0 = arith.constant 0 : i32
    %c0_i32_1 = arith.constant 0 : i32
    %c0_i32_2 = arith.constant 0 : i32
    return %c0_i32, %c0_i32_0, %c0_i32_1 : i32, i32, i32
  }
  func.func @transform_2(%arg0: i32) -> (i32, i32) {
    %c0_i32 = arith.constant 0 : i32
    %c0_i32_0 = arith.constant 0 : i32
    %c0_i32_1 = arith.constant 0 : i32
    return %c0_i32, %c0_i32_0 : i32, i32
  }
  func.func @transform_3(%arg0: i32) -> (i32, i32, i32) {
    %c0_i32 = arith.constant 0 : i32
    %c0_i32_0 = arith.constant 0 : i32
    %c0_i32_1 = arith.constant 0 : i32
    %c0_i32_2 = arith.constant 0 : i32
    return %c0_i32, %c0_i32_0, %c0_i32_1 : i32, i32, i32
  }
  func.func @transform_4(%arg0: i32) -> (i32, i32) {
    %c0_i32 = arith.constant 0 : i32
    %c0_i32_0 = arith.constant 0 : i32
    %c0_i32_1 = arith.constant 0 : i32
    return %c0_i32, %c0_i32_0 : i32, i32
  }
  func.func @transform_5(%arg0: i32) -> (i32, i32) {
    %c0_i32 = arith.constant 0 : i32
    %c0_i32_0 = arith.constant 0 : i32
    %c0_i32_1 = arith.constant 0 : i32
    return %c0_i32, %c0_i32_0 : i32, i32
  }
  func.func @transform_6(%arg0: i32) -> (i32, i32) {
    %c0_i32 = arith.constant 0 : i32
    %c0_i32_0 = arith.constant 0 : i32
    %c0_i32_1 = arith.constant 0 : i32
    return %c0_i32, %c0_i32_0 : i32, i32
  }
  func.func @transform_7(%arg0: i32) -> (i32, i32, i32) {
    %c0_i32 = arith.constant 0 : i32
    %c0_i32_0 = arith.constant 0 : i32
    %c0_i32_1 = arith.constant 0 : i32
    return %arg0, %c0_i32, %c0_i32_0 : i32, i32, i32
  }
}

module attributes {stable_mosaic.version = 11 : i64} {
  func.func @_lstm_kernel(%arg0: i32, %arg1: memref<1x8x512xf32, #tpu.memory_space<vmem>>, %arg2: memref<128x512xf32, #tpu.memory_space<vmem>>, %arg3: memref<1x128xf32, #tpu.memory_space<vmem>>, %arg4: memref<1x1xf32, #tpu.memory_space<vmem>>, %arg5: memref<8x1xf32, #tpu.memory_space<vmem>>, %arg6: memref<8x128xf32, #tpu.memory_space<vmem>>, %arg7: memref<8x128xf32, #tpu.memory_space<vmem>>) attributes {dimension_semantics = [#tpu.dimension_semantics<arbitrary>], iteration_bounds = array<i64: 8>, scalar_prefetch = 0 : i64, scratch_operands = 2 : i64, tpu.core_type = #tpu.core_type<tc>, window_params = [{transform_indices = @transform_0, window_bounds = array<i64: 1, 8, 512>}, {pipeline_mode = #tpu.pipeline_mode<synchronous>, transform_indices = @transform_1, window_bounds = array<i64: 128, 512>}, {pipeline_mode = #tpu.pipeline_mode<synchronous>, transform_indices = @transform_2, window_bounds = array<i64: 1, 128>}, {pipeline_mode = #tpu.pipeline_mode<synchronous>, transform_indices = @transform_3, window_bounds = array<i64: 1, 1>}, {pipeline_mode = #tpu.pipeline_mode<synchronous>, transform_indices = @transform_4, window_bounds = array<i64: 8, 1>}]} {
    %c0_i32 = arith.constant 0 : i32
    %0 = arith.cmpi eq, %arg0, %c0_i32 : i32
    %1 = arith.extui %0 : i1 to i32
    %c0_i32_0 = arith.constant 0 : i32
    %2 = arith.cmpi ne, %1, %c0_i32_0 : i32
    scf.if %2 {
      %cst_17 = arith.constant 0.000000e+00 : f32
      %40 = vector.broadcast %cst_17 : f32 to vector<8x128xf32>
      %c0_18 = arith.constant 0 : index
      %c0_19 = arith.constant 0 : index
      %41 = vector.load %arg6[%c0_18, %c0_19] : memref<8x128xf32, #tpu.memory_space<vmem>>, vector<8x128xf32>
      tpu.vector_store %arg6[%c0_18, %c0_19], %40 {strides = array<i32>} : memref<8x128xf32, #tpu.memory_space<vmem>>, vector<8x128xf32>,
      %cst_20 = arith.constant 0.000000e+00 : f32
      %42 = vector.broadcast %cst_20 : f32 to vector<8x128xf32>
      %c0_21 = arith.constant 0 : index
      %c0_22 = arith.constant 0 : index
      %43 = vector.load %arg7[%c0_21, %c0_22] : memref<8x128xf32, #tpu.memory_space<vmem>>, vector<8x128xf32>
      tpu.vector_store %arg7[%c0_21, %c0_22], %42 {strides = array<i32>} : memref<8x128xf32, #tpu.memory_space<vmem>>, vector<8x128xf32>,
    } else {
    }
    %c0 = arith.constant 0 : index
    %c0_1 = arith.constant 0 : index
    %c0_2 = arith.constant 0 : index
    %3 = vector.load %arg1[%c0, %c0_1, %c0_2] : memref<1x8x512xf32, #tpu.memory_space<vmem>>, vector<1x8x512xf32>
    %4 = vector.shape_cast %3 : vector<1x8x512xf32> to vector<8x512xf32>
    %c0_3 = arith.constant 0 : index
    %c0_4 = arith.constant 0 : index
    %5 = vector.load %arg6[%c0_3, %c0_4] : memref<8x128xf32, #tpu.memory_space<vmem>>, vector<8x128xf32>
    %c0_5 = arith.constant 0 : index
    %c0_6 = arith.constant 0 : index
    %6 = vector.load %arg2[%c0_5, %c0_6] : memref<128x512xf32, #tpu.memory_space<vmem>>, vector<128x512xf32>
    %cst = arith.constant dense<0.000000e+00> : vector<8x512xf32>
    %7 = tpu.matmul %5, %6, %cst {dimension_numbers = #tpu.dot_dimension_numbers<[1], [0], [0], [1], [0, 0, 1, 1], [], []>} : vector<8x128xf32>, vector<128x512xf32>, vector<8x512xf32> -> vector<8x512xf32>
    %8 = arith.addf %4, %7 : vector<8x512xf32>
    %9 = vector.extract_strided_slice %8 {offsets = [0, 0], sizes = [8, 128], strides = [1, 1]} : vector<8x512xf32> to vector<8x128xf32>
    %10 = arith.negf %9 : vector<8x128xf32>
    %11 = math.exp %10 : vector<8x128xf32>
    %cst_7 = arith.constant 1.000000e+00 : f32
    %12 = vector.broadcast %cst_7 : f32 to vector<8x128xf32>
    %13 = arith.addf %12, %11 : vector<8x128xf32>
    %14 = arith.divf %12, %13 : vector<8x128xf32>
    %15 = vector.extract_strided_slice %8 {offsets = [0, 128], sizes = [8, 128], strides = [1, 1]} : vector<8x512xf32> to vector<8x128xf32>
    %16 = arith.negf %15 : vector<8x128xf32>
    %17 = math.exp %16 : vector<8x128xf32>
    %cst_8 = arith.constant 1.000000e+00 : f32
    %18 = vector.broadcast %cst_8 : f32 to vector<8x128xf32>
    %19 = arith.addf %18, %17 : vector<8x128xf32>
    %20 = arith.divf %18, %19 : vector<8x128xf32>
    %21 = vector.extract_strided_slice %8 {offsets = [0, 256], sizes = [8, 128], strides = [1, 1]} : vector<8x512xf32> to vector<8x128xf32>
    %22 = math.tanh %21 : vector<8x128xf32>
    %23 = vector.extract_strided_slice %8 {offsets = [0, 384], sizes = [8, 128], strides = [1, 1]} : vector<8x512xf32> to vector<8x128xf32>
    %24 = arith.negf %23 : vector<8x128xf32>
    %25 = math.exp %24 : vector<8x128xf32>
    %cst_9 = arith.constant 1.000000e+00 : f32
    %26 = vector.broadcast %cst_9 : f32 to vector<8x128xf32>
    %27 = arith.addf %26, %25 : vector<8x128xf32>
    %28 = arith.divf %26, %27 : vector<8x128xf32>
    %c0_10 = arith.constant 0 : index
    %c0_11 = arith.constant 0 : index
    %29 = vector.load %arg7[%c0_10, %c0_11] : memref<8x128xf32, #tpu.memory_space<vmem>>, vector<8x128xf32>
    %30 = arith.mulf %20, %29 : vector<8x128xf32>
    %31 = arith.mulf %14, %22 : vector<8x128xf32>
    %32 = arith.addf %30, %31 : vector<8x128xf32>
    %33 = math.tanh %32 : vector<8x128xf32>
    %34 = arith.mulf %28, %33 : vector<8x128xf32>
    %c0_12 = arith.constant 0 : index
    %c0_13 = arith.constant 0 : index
    %35 = vector.load %arg6[%c0_12, %c0_13] : memref<8x128xf32, #tpu.memory_space<vmem>>, vector<8x128xf32>
    tpu.vector_store %arg6[%c0_12, %c0_13], %34 {strides = array<i32>} : memref<8x128xf32, #tpu.memory_space<vmem>>, vector<8x128xf32>,
    %c0_14 = arith.constant 0 : index
    %c0_15 = arith.constant 0 : index
    %36 = vector.load %arg7[%c0_14, %c0_15] : memref<8x128xf32, #tpu.memory_space<vmem>>, vector<8x128xf32>
    tpu.vector_store %arg7[%c0_14, %c0_15], %32 {strides = array<i32>} : memref<8x128xf32, #tpu.memory_space<vmem>>, vector<8x128xf32>,
    %c7_i32 = arith.constant 7 : i32
    %37 = arith.cmpi eq, %arg0, %c7_i32 : i32
    %38 = arith.extui %37 : i1 to i32
    %c0_i32_16 = arith.constant 0 : i32
    %39 = arith.cmpi ne, %38, %c0_i32_16 : i32
    scf.if %39 {
      %c0_17 = arith.constant 0 : index
      %c0_18 = arith.constant 0 : index
      %40 = vector.load %arg3[%c0_17, %c0_18] : memref<1x128xf32, #tpu.memory_space<vmem>>, vector<1x128xf32>
      %41 = vector.broadcast %40 : vector<1x128xf32> to vector<8x128xf32>
      %42 = arith.mulf %34, %41 : vector<8x128xf32>
      %cst_19 = arith.constant dense<0.000000e+00> : vector<8xf32>
      %43 = vector.multi_reduction <add>, %42, %cst_19 [1] : vector<8x128xf32> to vector<8xf32>
      %44 = vector.shape_cast %43 : vector<8xf32> to vector<8x1xf32>
      %c0_20 = arith.constant 0 : index
      %c0_21 = arith.constant 0 : index
      %45 = vector.load %arg4[%c0_20, %c0_21] : memref<1x1xf32, #tpu.memory_space<vmem>>, vector<1x1xf32>
      %46 = vector.broadcast %45 : vector<1x1xf32> to vector<8x1xf32>
      %47 = arith.addf %44, %46 : vector<8x1xf32>
      %c0_22 = arith.constant 0 : index
      %c0_23 = arith.constant 0 : index
      %48 = vector.load %arg5[%c0_22, %c0_23] : memref<8x1xf32, #tpu.memory_space<vmem>>, vector<8x1xf32>
      tpu.vector_store %arg5[%c0_22, %c0_23], %47 {strides = array<i32>} : memref<8x1xf32, #tpu.memory_space<vmem>>, vector<8x1xf32>,
    } else {
    }
    return
  }
  func.func @transform_0(%arg0: i32) -> (i32, i32, i32) {
    %c0_i32 = arith.constant 0 : i32
    %c0_i32_0 = arith.constant 0 : i32
    %c0_i32_1 = arith.constant 0 : i32
    return %arg0, %c0_i32, %c0_i32_0 : i32, i32, i32
  }
  func.func @transform_1(%arg0: i32) -> (i32, i32) {
    %c0_i32 = arith.constant 0 : i32
    %c0_i32_0 = arith.constant 0 : i32
    %c0_i32_1 = arith.constant 0 : i32
    return %c0_i32, %c0_i32_0 : i32, i32
  }
  func.func @transform_2(%arg0: i32) -> (i32, i32) {
    %c0_i32 = arith.constant 0 : i32
    %c0_i32_0 = arith.constant 0 : i32
    %c0_i32_1 = arith.constant 0 : i32
    return %c0_i32, %c0_i32_0 : i32, i32
  }
  func.func @transform_3(%arg0: i32) -> (i32, i32) {
    %c0_i32 = arith.constant 0 : i32
    %c0_i32_0 = arith.constant 0 : i32
    %c0_i32_1 = arith.constant 0 : i32
    return %c0_i32, %c0_i32_0 : i32, i32
  }
  func.func @transform_4(%arg0: i32) -> (i32, i32) {
    %c0_i32 = arith.constant 0 : i32
    %c0_i32_0 = arith.constant 0 : i32
    %c0_i32_1 = arith.constant 0 : i32
    return %c0_i32, %c0_i32_0 : i32, i32
  }
}

</mosaic_0001>

<bundles_post_ra>
// kernel: eeg_conv_bilstm_forward.3
= control target key start
LH: loop header
LB: loop body
LE: loop exit
PB: predicated region body
PF: predicated region fallthrough
CT: control target
= control target key end

     0   :  { %s629_s17 = smov 0   ;;  %s853_s0 = inlined_call_operand.vmem [shape: f32[8,8,512], index: 0, kind: input, shape index: {}]   ;;  %s854_s1 = inlined_call_operand.vmem [shape: f32[128,512], index: 1, kind: input, shape index: {}]   ;;  %s855_s2 = inlined_call_operand.vmem [shape: f32[1,128], index: 2, kind: input, shape index: {}]   ;;  %s856_s3 = inlined_call_operand.<no memory space> [shape: f32[1,1], index: 3, kind: input, shape index: {}]   ;;  %s857_s4 = inlined_call_operand.vmem [shape: f32[8,1], index: 4, kind: output, shape index: {}]  }
   0x1   :  { %v9_v0 = vstv %s856_s3 }
   0x2   :  { %10 = vst [vmem:[#allocation4] sm:$0x1] %v9_v0 }
   0x3 LB: > { %s635_s18 = sadd.s32 4294967295, %s597_s17   ;;  %p488_p0 = scmp.ge.s32.totalorder %s597_s17, 1  ;;  %s597_s17 = sphi %s629_s17, %s16_s17  }
   0x4   : > { %p159_p1 = scmp.lt.s32.totalorder %s597_s17, 9 }
   0x6   : > { %p160_p2 = pnand %p488_p0, %p159_p1 }
   0x7   : > { %p180_p3 = scmp.lt.s32.totalorder (!%p160_p2), %s635_s18, 7  ;;  %p491_p4 = scmp.ne.s32.totalorder (!%p160_p2), %s635_s18, 0 }
   0x8   : > { %163 = sbr.rel (%p160_p2) target bundleno = 464 (0x1d0), region = 36 }
   0xf   : > { %s181_s3 = scalar_select %p180_p3, %s635_s18, 7 }
  0x10   : > { %188 = sbr.rel (%p491_p4) target bundleno = 23 (0x17), region = 40  ;;  %v599_v1 = vmov (!%p491_p4), 0.0  }
  0x11   : > { %s500_s19 = sshll.u32 %s181_s3, 5  ;;  %189 = vst [vmem:[#allocation2] sm:$0xff] (!%p491_p4), %v599_v1  ;;  %190 = vst [vmem:[#allocation3] sm:$0xff] (!%p491_p4), %v599_v1 }
  0x12   : > { %s644_s22 = scalar_lea.vmem %s853_s0, %s500_s19 }
  0x17 PF: > { %v197_v2 = vld [vmem:[%s854_s1 + $0x8] sm:$0xff]  ;;  %v196_v4 = vld [vmem:[%s854_s1] sm:$0xff]  ;;  %v600_v9 = vmov 0.0   ;;  %v199_v21 = vld [vmem:[%s854_s1 + $0x18] sm:$0xff]  ;;  %p495_p5 = scmp.ne.s32.totalorder %s635_s18, 7 }
  0x18   : > { %v201_v3 = vld [vmem:[%s854_s1 + $0x28] sm:$0xff]  ;;  %v200_v6 = vld [vmem:[%s854_s1 + $0x20] sm:$0xff]  ;;  %324 = vmatprep.mubr.f32.mxu0 %v600_v9  ;;  %395 = vmatprep.mubr.f32.mxu1 %v600_v9  ;;  %v203_v22 = vld [vmem:[%s854_s1 + $0x38] sm:$0xff]  ;;  %vm455_vm0 = vcmask (!%p495_p5), 7168  }
  0x19   : > { %v501_v5 = vpack.c.bf16 %v201_v3, %v197_v2  ;;  %v205_v7 = vld [vmem:[%s854_s1 + $0x48] sm:$0xff]  ;;  %v503_v10 = vpack.c.bf16 %v200_v6, %v196_v4  ;;  %v204_v12 = vld [vmem:[%s854_s1 + $0x40] sm:$0xff]  ;;  %v533_v24 = vpack.c.bf16 %v203_v22, %v199_v21  ;;  %v198_v25 = vld [vmem:[%s854_s1 + $0x10] sm:$0xff] }
  0x1a   : > { %v209_v8 = vld [vmem:[%s854_s1 + $0x68] sm:$0xff]  ;;  %v208_v13 = vld [vmem:[%s854_s1 + $0x60] sm:$0xff]  ;;  %v202_v26 = vld [vmem:[%s854_s1 + $0x30] sm:$0xff] }
  0x1b   : > { %v505_v11 = vpack.c.bf16 %v209_v8, %v205_v7  ;;  %v213_v14 = vld [vmem:[%s854_s1 + $0x88] sm:$0xff]  ;;  %502 = vmatprep.subr.bf16.mxu0 %v501_v5  ;;  %v507_v16 = vpack.c.bf16 %v208_v13, %v204_v12  ;;  %v212_v17 = vld [vmem:[%s854_s1 + $0x80] sm:$0xff]  ;;  %v535_v27 = vpack.c.bf16 %v202_v26, %v198_v25  ;;  %534 = vmatprep.subr.bf16.mxu1 %v533_v24  ;;  %v207_v29 = vld [vmem:[%s854_s1 + $0x58] sm:$0xff] }
  0x1c   : > { %v217_v15 = vld [vmem:[%s854_s1 + $0xa8] sm:$0xff]  ;;  %504 = vmatpush1.bf16.msra.mxu0 %v503_v10  ;;  %v216_v18 = vld [vmem:[%s854_s1 + $0xa0] sm:$0xff]  ;;  %v211_v30 = vld [vmem:[%s854_s1 + $0x78] sm:$0xff] }
  0x1d   : > { %506 = vmatprep.subr.bf16.mxu0 %v505_v11  ;;  %v509_v19 = vpack.c.bf16 %v217_v15, %v213_v14  ;;  %v221_v20 = vld [vmem:[%s854_s1 + $0xc8] sm:$0xff]  ;;  %v511_v28 = vpack.c.bf16 %v216_v18, %v212_v17  ;;  %v206_v31 = vld [vmem:[%s854_s1 + $0x50] sm:$0xff]  ;;  %v220_v33 = vld [vmem:[%s854_s1 + $0xc0] sm:$0xff]  ;;  %536 = vmatpush1.bf16.msra.mxu1 %v535_v27  ;;  %v537_v35 = vpack.c.bf16 %v211_v30, %v207_v29 }
  0x1e   : > { %v225_v23 = vld [vmem:[%s854_s1 + $0xe8] sm:$0xff]  ;;  %v224_v34 = vld [vmem:[%s854_s1 + $0xe0] sm:$0xff]  ;;  %v210_v36 = vld [vmem:[%s854_s1 + $0x70] sm:$0xff] }
  0x1f   : > { %v513_v32 = vpack.c.bf16 %v225_v23, %v221_v20  ;;  %v229_v37 = vld [vmem:[%s854_s1 + $0x108] sm:$0xff]  ;;  %v539_v39 = vpack.c.bf16 %v210_v36, %v206_v31  ;;  %v215_v40 = vld [vmem:[%s854_s1 + $0x98] sm:$0xff]  ;;  %538 = vmatprep.subr.bf16.mxu1 %v537_v35  ;;  %v214_v42 = vld [vmem:[%s854_s1 + $0x90] sm:$0xff]  ;;  %v515_v44 = vpack.c.bf16 %v224_v34, %v220_v33 }
  0x20   : > { %508 = vmatpush1.bf16.msra.mxu0 %v507_v16  ;;  %v233_v38 = vld [vmem:[%s854_s1 + $0x128] sm:$0xff]  ;;  %v219_v41 = vld [vmem:[%s854_s1 + $0xb8] sm:$0xff]  ;;  %v218_v43 = vld [vmem:[%s854_s1 + $0xb0] sm:$0xff] }
  0x21   : > { %510 = vmatprep.subr.bf16.mxu0 %v509_v19  ;;  %v228_v45 = vld [vmem:[%s854_s1 + $0x100] sm:$0xff]  ;;  %v541_v47 = vpack.c.bf16 %v219_v41, %v215_v40  ;;  %v517_v48 = vpack.c.bf16 %v233_v38, %v229_v37  ;;  %540 = vmatpush1.bf16.msra.mxu1 %v539_v39  ;;  %v237_v49 = vld [vmem:[%s854_s1 + $0x148] sm:$0xff]  ;;  %v543_v50 = vpack.c.bf16 %v218_v43, %v214_v42  ;;  %v223_v51 = vld [vmem:[%s854_s1 + $0xd8] sm:$0xff] }
  0x22   : > { %v232_v46 = vld [vmem:[%s854_s1 + $0x120] sm:$0xff]  ;;  %v227_v52 = vld [vmem:[%s854_s1 + $0xf8] sm:$0xff]  ;;  %v241_v53 = vld [vmem:[%s854_s1 + $0x168] sm:$0xff] }
  0x23   : > { %542 = vmatprep.subr.bf16.mxu1 %v541_v47  ;;  %v545_v54 = vpack.c.bf16 %v227_v52, %v223_v51  ;;  %v222_v55 = vld [vmem:[%s854_s1 + $0xd0] sm:$0xff]  ;;  %v519_v57 = vpack.c.bf16 %v232_v46, %v228_v45  ;;  %v231_v58 = vld [vmem:[%s854_s1 + $0x118] sm:$0xff]  ;;  %v521_v60 = vpack.c.bf16 %v241_v53, %v237_v49  ;;  %v236_v61 = vld [vmem:[%s854_s1 + $0x140] sm:$0xff] }
  0x24   : > { %512 = vmatpush1.bf16.msra.mxu0 %v511_v28  ;;  %v226_v56 = vld [vmem:[%s854_s1 + $0xf0] sm:$0xff]  ;;  %v235_v59 = vld [vmem:[%s854_s1 + $0x138] sm:$0xff]  ;;  %v240_v62 = vld [vmem:[%s854_s1 + $0x160] sm:$0xff] }
  0x25   : > { %514 = vmatprep.subr.bf16.mxu0 %v513_v32  ;;  %544 = vmatpush1.bf16.msra.mxu1 %v543_v50  ;;  %v245_v63 = vld [vmem:[%s854_s1 + $0x188] sm:$0xff]  ;;  %v547_v0 = vpack.c.bf16 %v226_v56, %v222_v55  ;;  %v549_v2 = vpack.c.bf16 %v235_v59, %v231_v58  ;;  %v230_v3 = vld [vmem:[%s854_s1 + $0x110] sm:$0xff]  ;;  %v239_v5 = vld [vmem:[%s854_s1 + $0x158] sm:$0xff]  ;;  %v523_v7 = vpack.c.bf16 %v240_v62, %v236_v61 }
  0x26   : > { %v249_v1 = vld [vmem:[%s854_s1 + $0x1a8] sm:$0xff]  ;;  %546 = vmatprep.subr.bf16.mxu1 %v545_v54  ;;  %v234_v4 = vld [vmem:[%s854_s1 + $0x130] sm:$0xff]  ;;  %v243_v6 = vld [vmem:[%s854_s1 + $0x178] sm:$0xff] }
  0x27   : > { %v525_v8 = vpack.c.bf16 %v249_v1, %v245_v63  ;;  %v244_v9 = vld [vmem:[%s854_s1 + $0x180] sm:$0xff]  ;;  %v253_v11 = vld [vmem:[%s854_s1 + $0x1c8] sm:$0xff]  ;;  %v551_v12 = vpack.c.bf16 %v234_v4, %v230_v3  ;;  %v553_v14 = vpack.c.bf16 %v243_v6, %v239_v5  ;;  %v238_v15 = vld [vmem:[%s854_s1 + $0x150] sm:$0xff] }
  0x28   : > { %516 = vmatpush1.bf16.msra.mxu0 %v515_v44  ;;  %v248_v10 = vld [vmem:[%s854_s1 + $0x1a0] sm:$0xff]  ;;  %v257_v13 = vld [vmem:[%s854_s1 + $0x1e8] sm:$0xff]  ;;  %v242_v16 = vld [vmem:[%s854_s1 + $0x170] sm:$0xff] }
  0x29   : > { %518 = vmatprep.subr.bf16.mxu0 %v517_v48  ;;  %548 = vmatpush1.bf16.msra.mxu1 %v547_v0  ;;  %v247_v17 = vld [vmem:[%s854_s1 + $0x198] sm:$0xff]  ;;  %v527_v19 = vpack.c.bf16 %v248_v10, %v244_v9  ;;  %v529_v20 = vpack.c.bf16 %v257_v13, %v253_v11  ;;  %v252_v21 = vld [vmem:[%s854_s1 + $0x1c0] sm:$0xff]  ;;  %v555_v23 = vpack.c.bf16 %v242_v16, %v238_v15  ;;  %v246_v25 = vld [vmem:[%s854_s1 + $0x190] sm:$0xff] }
  0x2a   : > { %550 = vmatprep.subr.bf16.mxu1 %v549_v2  ;;  %v251_v18 = vld [vmem:[%s854_s1 + $0x1b8] sm:$0xff]  ;;  %v256_v22 = vld [vmem:[%s854_s1 + $0x1e0] sm:$0xff]  ;;  %v250_v26 = vld [vmem:[%s854_s1 + $0x1b0] sm:$0xff] }
  0x2b   : > { %v557_v24 = vpack.c.bf16 %v251_v18, %v247_v17  ;;  %v255_v27 = vld [vmem:[%s854_s1 + $0x1d8] sm:$0xff]  ;;  %v531_v29 = vpack.c.bf16 %v256_v22, %v252_v21  ;;  %v559_v30 = vpack.c.bf16 %v250_v26, %v246_v25  ;;  %v254_v32 = vld [vmem:[%s854_s1 + $0x1d0] sm:$0xff]  ;;  %v195_v34 = vld [vmem:[#allocation2] sm:$0xff] }
  0x2c   : > { %520 = vmatpush1.bf16.msra.mxu0 %v519_v57  ;;  %v259_v28 = vld [vmem:[%s854_s1 + $0x1f8] sm:$0xff]  ;;  %v258_v33 = vld [vmem:[%s854_s1 + $0x1f0] sm:$0xff]  ;;  %v191_v36 = vld [vmem:[%s644_s22] sm:$0xff] }
  0x2d   : > { %522 = vmatprep.subr.bf16.mxu0 %v521_v60  ;;  %552 = vmatpush1.bf16.msra.mxu1 %v551_v12  ;;  %v561_v31 = vpack.c.bf16 %v259_v28, %v255_v27  ;;  %v563_v35 = vpack.c.bf16 %v258_v33, %v254_v32  ;;  %v192_v37 = vld [vmem:[%s644_s22 + $0x8] sm:$0xff]  ;;  %v194_v44 = vld [vmem:[%s644_s22 + $0x18] sm:$0xff]  ;;  %v193_v48 = vld [vmem:[%s644_s22 + $0x10] sm:$0xff] }
  0x2e   : > { %554 = vmatprep.subr.bf16.mxu1 %v553_v14  ;;  %v425_v57 = vld [vmem:[#allocation3] sm:$0xff]  ;;  %v496_v3 = vld [vmem:[%s855_s2] ss:$0 sm:$0xff] (!%p495_p5)  ;;  %v497_v5 = vld [vmem:[#allocation4] ss:$0 sm:$0xff] (!%p495_p5) }
  0x30   : > { %524 = vmatpush1.bf16.msra.mxu0 %v523_v7 }
  0x31   : > { %526 = vmatprep.subr.bf16.mxu0 %v525_v8  ;;  %556 = vmatpush1.bf16.msra.mxu1 %v555_v23 }
  0x32   : > { %558 = vmatprep.subr.bf16.mxu1 %v557_v24 }
  0x34   : > { %528 = vmatpush1.bf16.msra.mxu0 %v527_v19 }
  0x35   : > { %530 = vmatprep.subr.bf16.mxu0 %v529_v20  ;;  %560 = vmatpush1.bf16.msra.mxu1 %v559_v30 }
  0x36   : > { %562 = vmatprep.subr.bf16.mxu1 %v561_v31 }
  0x38   : > { %532 = vmatpush1.bf16.msra.mxu0 %v531_v29 }
  0x39   : > { %564 = vmatpush1.bf16.msra.mxu1 %v563_v35 }
  0x3b   : > { %325 = vmatmul.mubr.f32.vlgmr.msra.gmra.mrb[0].mxu0 %v195_v34 }
  0x3c   : > { %396 = vmatmul.mubr.f32.vlgmr.msra.gmra.mrb[0].mxu1 %v195_v34 }
 0x10e   : > { %v326_v38 = vpop.f32.mrb[0].mxu0 }
 0x10f   : > { %v402_v39 = vadd.f32 %v326_v38, %v191_v36  ;;  %v328_v40 = vpop.f32.mrb[1].mxu0  ;;  %v397_v45 = vpop.f32.mrb[0].mxu1 }
 0x110   : > { %v403_v41 = vadd.f32 %v328_v40, %v192_v37  ;;  %v399_v46 = vpop.f32.mrb[1].mxu1  ;;  %v404_v50 = vadd.f32 %v397_v45, %v193_v48 }
 0x111   : > { %v492_v42 = vmul.f32 -1.442695, %v402_v39  ;;  %v405_v47 = vadd.f32 %v399_v46, %v194_v44 }
 0x112   : > { %v493_v43 = vmul.f32 -1.442695, %v403_v41 }
 0x113   : > { %575 = vpow2.f32 %v492_v42  ;;  %v494_v49 = vmul.f32 -1.442695, %v405_v47 }
 0x114   : > { %577 = vpow2.f32 %v493_v43 }
 0x115   : > { %579 = vpow2.f32 %v494_v49 }
 0x116   : > { %581 = vtanh.f32 %v404_v50 }
 0x11d   : > { %v576_v51 = vpop.eup %575 }
 0x11e   : > { %v578_v52 = vpop.eup %577  ;;  %v409_v53 = vadd.f32 1.0, %v576_v51 }
 0x11f   : > { %v415_v54 = vadd.f32 1.0, %v578_v52  ;;  %v580_v55 = vpop.eup %579 }
 0x120   : > { %583 = vrcp.f32 %v409_v53  ;;  %v582_v56 = vpop.eup %581  ;;  %v422_v59 = vadd.f32 1.0, %v580_v55 }
 0x121   : > { %585 = vrcp.f32 %v415_v54 }
 0x122   : > { %587 = vrcp.f32 %v422_v59 }
 0x12a   : > { %v584_v58 = vpop.eup %583 }
 0x12b   : > { %v586_v60 = vpop.eup %585  ;;  %v427_v61 = vmul.f32 %v584_v58, %v582_v56 }
 0x12c   : > { %v426_v62 = vmul.f32 %v586_v60, %v425_v57  ;;  %v588_v0 = vpop.eup %587 }
 0x12e   : > { %v428_v63 = vadd.f32 %v427_v61, %v426_v62 }
 0x130   : > { %589 = vtanh.f32 %v428_v63  ;;  %432 = vst [vmem:[#allocation3] sm:$0xff] %v428_v63 }
 0x137   : > { %436 = sbr.rel (%p495_p5) target bundleno = 464 (0x1d0), region = 44 }
 0x13a   : > { %v590_v1 = vpop.eup %589 }
 0x13b   : > { %v430_v2 = vmul.f32 %v590_v1, %v588_v0 }
 0x13d   : > { %431 = vst [vmem:[#allocation2] sm:$0xff] %v430_v2  ;;  %v444_v4 = vmul.f32 (!%p495_p5), %v496_v3, %v430_v2 }
 0x13f   : > { %445 = vadd.xlane.f32.xlu0 %v444_v4 }
 0x1cc   : > { %v446_v6 = vpop.xlane.xlu0 %445 }
 0x1cd   : > { %v454_v7 = vadd.f32 %v497_v5, %v446_v6 }
 0x1cf   : > { %456 = vst.msk [vmem:[%s857_s4] sm:$0xff] %vm455_vm0, %v454_v7 }
 0x1d0 PF: > { %s16_s17 = sadd.s32 1, %s597_s17  }
 0x1d1   : > { %p13_p6 = scmp.ge.s32.totalorder %s16_s17, 10  }
 0x1d3   :  { %15 = sbr.rel (!%p13_p6) target bundleno = 3 (0x3), region = 70 }

// kernel: eeg_conv_bilstm_forward.2
= control target key start
LH: loop header
LB: loop body
LE: loop exit
PB: predicated region body
PF: predicated region fallthrough
CT: control target
= control target key end

     0   :  { %12 = vsyncpa [#allocation4], 0  ;;  %s2748_s24 = smov 0   ;;  %s3041_s0 = inlined_call_operand.vmem [shape: f32[2,36,4], index: 0, kind: input, shape index: {}]   ;;  %s3042_s1 = inlined_call_operand.vmem [shape: f32[5,4,32], index: 1, kind: input, shape index: {}]   ;;  %s3043_s2 = inlined_call_operand.vmem [shape: f32[1,32], index: 2, kind: input, shape index: {}]   ;;  %s3044_s3 = inlined_call_operand.hbm [shape: f32[5,32,64], index: 3, kind: input, shape index: {}]   ;;  %s3045_s4 = inlined_call_operand.vmem [shape: f32[1,64], index: 4, kind: input, shape index: {}]   ;;  %s3046_s5 = inlined_call_operand.vmem [shape: f32[64,512], index: 5, kind: input, shape index: {}]   ;;  %s3047_s6 = inlined_call_operand.vmem [shape: f32[1,512], index: 6, kind: input, shape index: {}]   ;;  %s3048_s7 = inlined_call_operand.vmem [shape: f32[2,8,512], index: 7, kind: output, shape index: {}]  }
   0x1 LB: > { %s2754_s25 = sadd.s32 4294967295, %s2700_s24   ;;  %p2203_p0 = scmp.ge.s32.totalorder %s2700_s24, 1  ;;  %s2700_s24 = sphi %s2748_s24, %s18_s24  }
   0x2   : > { %p201_p1 = scmp.lt.s32.totalorder %s2700_s24, 3  ;;  %s2702_s26 = smov [#allocation3]  }
   0x3   : > { %s219_s27 = sshll.u32 %s2702_s26, 4  ;;  %p3049_p3 = scmp.eq.s32.totalorder %s2754_s25, 0  ;;  %s220_s27 = int_to_ptr.vmem [resolvable:$true] %s219_s27 }
   0x4   : > { %p2758_p2 = pnand %p2203_p0, %p201_p1  ;;  %s2662_s9 = scalar_lea.hbm %s3044_s3, 2560 }
   0x5   : > { %p2663_p6 = scmp.ne.s32.totalorder %s3044_s3, %s2662_s9  ;;  %p2669_p10 = scmp.lt.u32.totalorder %s2662_s9, %s3044_s3 }
   0x6   : > { %s3051_s28 = scalar_select %p2758_p2, 1, 0 }
   0x7   : > { %p2642_p4 = pneg %p2758_p2 }
   0x9   : > { %p2767_p5 = pnand %p3049_p3, %p2642_p4 }
   0xb   : > { %p2664_p7 = pneg %p2767_p5 }
   0xd   : > { %p2665_p8 = pnand %p2664_p7, %p2663_p6 }
   0xf   : > { %p2666_p9 = pneg %p2665_p8 }
  0x11   : > { %p2671_p11 = pnand %p2669_p10, %p2666_p9 }
  0x13   : > { %2674 = shalt.err (!%p2671_p11)
}
  0x14   : > { %s2675_s14 = scalar_lea.vmem %s220_s27, 2560  ;;  %p2683_p1 = scmp.lt.s32.totalorder %s220_s27, %s220_s27 }
  0x15   : > { %p2676_p12 = scmp.ne.s32.totalorder %s220_s27, %s2675_s14  ;;  %p2684_p4 = scmp.lt.s32.totalorder %s2675_s14, %s2675_s14 }
  0x17   : > { %p2678_p13 = pnand %p2676_p12, %p2664_p7  ;;  %p2685_p3 = por %p2684_p4, %p2683_p1 }
  0x19   : > { %p2679_p0 = pneg %p2678_p13 }
  0x1b   : > { %p2686_p2 = pnand %p2685_p3, %p2679_p0 }
  0x1d   : > { %2689 = shalt.err (!%p2686_p2)
}
  0x1e   : > { %s2703_s15 = smov 128   ;;  %s2704_s16 = smov 8  }
  0x1f   : > { %2645 = dma.hbm_to_vmem [thread:$0]  (!%p2767_p5), %s3044_s3, 2560, %s220_s27, [#allocation4], %s2703_s15, %s2703_s15, %s2704_s16  }
  0x20   : > { %p3053_p6 = scmp.ne.s32.totalorder %s3051_s28, 0 }
  0x21   : > { %p3054_p8 = scmp.eq.s32.totalorder (!%p3053_p6), %s2754_s25, 0 }
  0x22   : > { %252 = sbr.rel (%p3053_p6) target bundleno = 775 (0x307), region = 48 }
  0x29   : > { %2695 = dma.done.wait (%p3054_p8), [#allocation4], 2560   ;;  %p3055_p7 = pmov %p3054_p8 }
  0x2a   : > { %p284_p2 = scmp.lt.s32.totalorder %s2754_s25, 1  ;;  %vm311_vm0 = vcmask 1043456   ;;  %vm304_vm1 = vcmask 31744   ;;  %v2214_v0 = vld [vmem:[%s3042_s1 + $0x4] sm:$0xf]  ;;  %vm1154_vm2 = vcmask 261120  }
  0x2b   : > { %2697 = vsyncadd (%p3055_p7), [#allocation4], 4294964736  ;;  %2353 = vmatprep.subr.msk.mxu0 %vm311_vm0, %v2214_v0  ;;  %2363 = vmatprep.subr.msk.mxu1 %vm311_vm0, %v2214_v0  ;;  %v294_v4 = vld [vmem:[%s3042_s1] sm:$0xf]  ;;  %v2229_v7 = vld [vmem:[%s3042_s1 + $0x8] sm:$0xf] }
  0x2c   : > { %s3057_s25 = smov (!%p284_p2, %s2754_s25), 1  ;;  %2354 = vmatpush3.msk.msra.mxu0 %vm311_vm0, %v2214_v0  ;;  %2364 = vmatpush3.msk.msra.mxu1 %vm311_vm0, %v2214_v0  ;;  %v2238_v10 = vld [vmem:[%s3042_s1 + $0xc] sm:$0xf]  ;;  %v2247_v13 = vld [vmem:[%s3042_s1 + $0x10] sm:$0xf]  ;;  %vm1157_vm3 = vcmask 257024  }
  0x2d   : > { %s2637_s19 = smul.u32 40, %s3057_s25  ;;  %2358 = vmatprep.subr.msk.mxu0 %vm311_vm0, %v294_v4  ;;  %2368 = vmatprep.subr.msk.mxu1 %vm311_vm0, %v294_v4  ;;  %v2705_v17 = vmov 0.0   ;;  %v1169_v18 = vld [vmem:[#allocation3 + $0x20] sm:$0xff]  ;;  %v1170_v19 = vld [vmem:[#allocation3 + $0x28] sm:$0xff]  ;;  %v2706_v21 = vmov 0.0|0.0   ;;  %v1171_v22 = vld [vmem:[#allocation3 + $0x30] sm:$0xff] }
  0x2e   : > { %1156 = vst.msk [vmem:[#allocation2 + $0x8] sm:$0xff] %vm1154_vm2, %v2705_v17  ;;  %1155 = vst.msk [vmem:[#allocation2] sm:$0xff] %vm1154_vm2, %v2705_v17  ;;  %v2514_v20 = vpack.c.bf16 %v1170_v19, %v1169_v18  ;;  %v1172_v23 = vld [vmem:[#allocation3 + $0x38] sm:$0xff]  ;;  %vm2707_vm4 = vmmov 0   ;;  %v2256_v27 = vld [vmem:[%s3043_s2] ss:$0 sm:$0xff] }
  0x2f   : > { %s2801_s22 = scalar_lea.vmem %s3041_s0, %s2637_s19  ;;  %1158 = vst.msk [vmem:[#allocation2 + $0x10] sm:$0xf] %vm1157_vm3, %v2705_v17  ;;  %v2517_v24 = vpack.c.bf16 %v1172_v23, %v1171_v22  ;;  %v1161_v36 = vld [vmem:[#allocation3] sm:$0xff]  ;;  %v1162_v37 = vld [vmem:[#allocation3 + $0x8] sm:$0xff]  ;;  %v1163_v39 = vld [vmem:[#allocation3 + $0x10] sm:$0xff]  ;;  %vm1984_vm5 = vcmask 523264  }
  0x30   : > { %v2212_v1 = vld [vmem:[%s2801_s22 + $0x1] ss:$2 sm:$0xff]  ;;  %v2221_v2 = vld [vmem:[%s2801_s22 + $0x2] ss:$2 sm:$0xff]  ;;  %v2213_v3 = vld [vmem:[%s2801_s22 + $0x11] ss:$2 sm:$0xff]  ;;  %v2520_v38 = vpack.c.bf16 %v1162_v37, %v1161_v36 }
  0x31   : > { %2355 = vmatprep.mubr.msk.f32.mxu0 %vm304_vm1, %v2212_v1  ;;  %v2222_v5 = vld [vmem:[%s2801_s22 + $0x12] ss:$2 sm:$0xff]  ;;  %2365 = vmatprep.mubr.msk.f32.mxu1 %vm304_vm1, %v2221_v2  ;;  %v2233_v9 = vld [vmem:[%s2801_s22 + $0x3] ss:$2 sm:$0xff]  ;;  %v2234_v11 = vld [vmem:[%s2801_s22 + $0x13] ss:$2 sm:$0xff] }
  0x32   : > { %2356 = vmatmul.mubr.msk.f32.vlgmr.msra.gmra.mrb[0].mxu0 %vm304_vm1, %v2213_v3  ;;  %v295_v6 = vld [vmem:[%s2801_s22] ss:$2 sm:$0xff]  ;;  %2366 = vmatmul.mubr.msk.f32.vlgmr.msra.gmra.mrb[0].mxu1 %vm304_vm1, %v2222_v5  ;;  %v2211_v8 = vld [vmem:[%s2801_s22 + $0x10] ss:$2 sm:$0xff]  ;;  %v2251_v15 = vld [vmem:[%s2801_s22 + $0x5] ss:$2 sm:$0xff] }
  0x33   : > { %2359 = vmatpush3.msk.msra.mxu0 %vm311_vm0, %v294_v4  ;;  %2369 = vmatpush3.msk.msra.mxu1 %vm311_vm0, %v294_v4  ;;  %v2242_v12 = vld [vmem:[%s2801_s22 + $0x4] ss:$2 sm:$0xff]  ;;  %v2243_v14 = vld [vmem:[%s2801_s22 + $0x14] ss:$2 sm:$0xff]  ;;  %v2252_v16 = vld [vmem:[%s2801_s22 + $0x15] ss:$2 sm:$0xff] }
  0x34   : > { %2360 = vmatprep.mubr.msk.f32.mxu0 %vm304_vm1, %v295_v6  ;;  %2370 = vmatprep.mubr.msk.f32.mxu1 %vm304_vm1, %v2212_v1  ;;  %v1164_v40 = vld [vmem:[#allocation3 + $0x18] sm:$0xff]  ;;  %v1465_v44 = vld [vmem:[#allocation3 + $0x40] sm:$0xff]  ;;  %v1466_v45 = vld [vmem:[#allocation3 + $0x48] sm:$0xff]  ;;  %s2272_s19 = sshll.u32 %s3057_s25, 5 }
  0x35   : > { %2373 = vmatprep.subr.msk.mxu0 %vm311_vm0, %v2229_v7  ;;  %2378 = vmatprep.subr.msk.mxu1 %vm311_vm0, %v2229_v7  ;;  %v2523_v43 = vpack.c.bf16 %v1164_v40, %v1163_v39  ;;  %v2538_v46 = vpack.c.bf16 %v1466_v45, %v1465_v44  ;;  %v1467_v47 = vld [vmem:[#allocation3 + $0x50] sm:$0xff]  ;;  %v1468_v48 = vld [vmem:[#allocation3 + $0x58] sm:$0xff]  ;;  %v1617_v51 = vld [vmem:[#allocation3 + $0x60] sm:$0xff]  ;;  %s293_s22 = scalar_lea.vmem %s3048_s7, %s2272_s19 }
  0x36   : > { %v2541_v50 = vpack.c.bf16 %v1468_v48, %v1467_v47  ;;  %v1618_v52 = vld [vmem:[#allocation3 + $0x68] sm:$0xff]  ;;  %v1619_v54 = vld [vmem:[#allocation3 + $0x70] sm:$0xff]  ;;  %v1620_v55 = vld [vmem:[#allocation3 + $0x78] sm:$0xff] }
  0x37   : > { %v2550_v53 = vpack.c.bf16 %v1618_v52, %v1617_v51  ;;  %v2553_v57 = vpack.c.bf16 %v1620_v55, %v1619_v54  ;;  %v1769_v58 = vld [vmem:[#allocation3 + $0x80] sm:$0xff]  ;;  %v1770_v59 = vld [vmem:[#allocation3 + $0x88] sm:$0xff]  ;;  %v1771_v61 = vld [vmem:[#allocation3 + $0x90] sm:$0xff] }
  0x38   : > { %v2562_v60 = vpack.c.bf16 %v1770_v59, %v1769_v58  ;;  %v1772_v62 = vld [vmem:[#allocation3 + $0x98] sm:$0xff]  ;;  %v1931_v63 = vld [vmem:[%s3046_s5 + $0x8] sm:$0xff]  ;;  %v1934_v6 = vld [vmem:[%s3046_s5 + $0x20] sm:$0xff]  ;;  %v1964_v58 = vlaneseq }
  0x39   : > { %v1935_v0 = vld [vmem:[%s3046_s5 + $0x28] sm:$0xff]  ;;  %v2565_v4 = vpack.c.bf16 %v1772_v62, %v1771_v61  ;;  %v1938_v18 = vld [vmem:[%s3046_s5 + $0x40] sm:$0xff]  ;;  %v1944_v23 = vld [vmem:[%s3046_s5 + $0x70] sm:$0xff] }
  0x3a   : > { %2361 = vmatmul.mubr.msk.f32.vlgmr.msra.gmra.mrb[0].mxu0 %vm304_vm1, %v2211_v8  ;;  %2371 = vmatmul.mubr.msk.f32.vlgmr.msra.gmra.mrb[0].mxu1 %vm304_vm1, %v2213_v3  ;;  %v1937_v3 = vld [vmem:[%s3046_s5 + $0x38] sm:$0xff]  ;;  %v1942_v19 = vld [vmem:[%s3046_s5 + $0x60] sm:$0xff]  ;;  %v1959_v39 = vld [vmem:[%s3046_s5 + $0xe8] sm:$0xff]  ;;  %v1965_v59 = vshrl.u32 %v1964_v58, 7 }
  0x3b   : > { %2374 = vmatpush3.msk.msra.mxu0 %vm311_vm0, %v2229_v7  ;;  %2379 = vmatpush3.msk.msra.mxu1 %vm311_vm0, %v2229_v7  ;;  %v2573_v7 = vpack.c.bf16 %v1935_v0, %v1931_v63  ;;  %v1958_v45 = vld [vmem:[%s3046_s5 + $0xe0] sm:$0xff]  ;;  %v1960_v47 = vld [vmem:[%s3046_s5 + $0xf0] sm:$0xff] }
  0x3c   : > { %2375 = vmatprep.mubr.msk.f32.mxu0 %vm304_vm1, %v2221_v2  ;;  %2380 = vmatprep.mubr.msk.f32.mxu1 %vm304_vm1, %v2233_v9  ;;  %v1933_v2 = vld [vmem:[%s3046_s5 + $0x18] sm:$0xff]  ;;  %v2267_v52 = vld [vmem:[%s3045_s4] ss:$0 sm:$0xff]  ;;  %v1974_v61 = vsub.s32 2, %v1965_v59  ;;  %v1970_v63 = vsub.s32 1, %v1965_v59  ;;  %v1978_v0 = vsub.s32 3, %v1965_v59 }
  0x3d   : > { %2383 = vmatprep.subr.msk.mxu0 %vm311_vm0, %v2238_v10  ;;  %2388 = vmatprep.subr.msk.mxu1 %vm311_vm0, %v2238_v10  ;;  %v2589_v8 = vpack.c.bf16 %v1937_v3, %v1933_v2  ;;  %v1962_v62 = vld [vmem:[%s3047_s6] sm:$0xf] }
  0x3e   : > { %v1975_v2 = vrot.slane %v1962_v62, %v1974_v61  ;;  %v1971_v3 = vrot.slane %v1962_v62, %v1970_v63 }
  0x42   : > { %2376 = vmatmul.mubr.msk.f32.vlgmr.msra.gmra.mrb[0].mxu0 %vm304_vm1, %v2222_v5  ;;  %2381 = vmatmul.mubr.msk.f32.vlgmr.msra.gmra.mrb[0].mxu1 %vm304_vm1, %v2234_v11  ;;  %v1930_v5 = vld [vmem:[%s3046_s5] sm:$0xff] }
  0x43   : > { %2384 = vmatpush3.msk.msra.mxu0 %vm311_vm0, %v2238_v10  ;;  %2389 = vmatpush3.msk.msra.mxu1 %vm311_vm0, %v2238_v10  ;;  %v1936_v10 = vld [vmem:[%s3046_s5 + $0x30] sm:$0xff] }
  0x44   : > { %2385 = vmatprep.mubr.msk.f32.mxu0 %vm304_vm1, %v2233_v9  ;;  %2390 = vmatprep.mubr.msk.f32.mxu1 %vm304_vm1, %v2242_v12  ;;  %v1932_v9 = vld [vmem:[%s3046_s5 + $0x10] sm:$0xff] }
  0x45   : > { %2393 = vmatprep.subr.msk.mxu0 %vm311_vm0, %v2247_v13  ;;  %2398 = vmatprep.subr.msk.mxu1 %vm311_vm0, %v2247_v13 }
  0x4a   : > { %2386 = vmatmul.mubr.msk.f32.vlgmr.msra.gmra.mrb[0].mxu0 %vm304_vm1, %v2234_v11  ;;  %2391 = vmatmul.mubr.msk.f32.vlgmr.msra.gmra.mrb[0].mxu1 %vm304_vm1, %v2243_v14  ;;  %v1939_v11 = vld [vmem:[%s3046_s5 + $0x48] sm:$0xff] }
  0x4b   : > { %2394 = vmatpush3.msk.msra.mxu0 %vm311_vm0, %v2247_v13  ;;  %2399 = vmatpush3.msk.msra.mxu1 %vm311_vm0, %v2247_v13  ;;  %v1941_v13 = vld [vmem:[%s3046_s5 + $0x58] sm:$0xff] }
  0x4c   : > { %2395 = vmatprep.mubr.msk.f32.mxu0 %vm304_vm1, %v2242_v12  ;;  %2400 = vmatprep.mubr.msk.f32.mxu1 %vm304_vm1, %v2251_v15  ;;  %v1943_v12 = vld [vmem:[%s3046_s5 + $0x68] sm:$0xff]  ;;  %v2575_v15 = vpack.c.bf16 %v1934_v6, %v1930_v5 }
  0x4d   : > { %2513 = vmatprep.subr.bf16.mxu0 %v2706_v21  ;;  %2525 = vmatprep.subr.bf16.mxu1 %v2706_v21 }
  0x52   : > { %2396 = vmatmul.mubr.msk.f32.vlgmr.msra.gmra.mrb[0].mxu0 %vm304_vm1, %v2243_v14  ;;  %2401 = vmatmul.mubr.msk.f32.vlgmr.msra.gmra.mrb[0].mxu1 %vm304_vm1, %v2252_v16  ;;  %v1945_v14 = vld [vmem:[%s3046_s5 + $0x78] sm:$0xff]  ;;  %v2591_v16 = vpack.c.bf16 %v1936_v10, %v1932_v9 }
  0x53   : > { %2515 = vmatpush3.bf16.msra.mxu0 %v2514_v20  ;;  %2527 = vmatpush3.bf16.msra.mxu1 %v2514_v20  ;;  %v1940_v20 = vld [vmem:[%s3046_s5 + $0x50] sm:$0xff]  ;;  %v2593_v22 = vpack.c.bf16 %v1945_v14, %v1941_v13 }
  0x54   : > { %2516 = vmatprep.subr.bf16.mxu0 %v2706_v21  ;;  %2528 = vmatprep.subr.bf16.mxu1 %v2706_v21 }
  0x55   : > { %2411 = vmatprep.mubr.msk.f32.mxu0 %vm2707_vm4, %v2705_v17  ;;  %2433 = vmatprep.mubr.msk.f32.mxu1 %vm2707_vm4, %v2705_v17 }
  0x57   : > { %2518 = vmatpush3.bf16.msra.mxu0 %v2517_v24  ;;  %2530 = vmatpush3.bf16.msra.mxu1 %v2517_v24  ;;  %v1947_v24 = vld [vmem:[%s3046_s5 + $0x88] sm:$0xff] }
  0x58   : > { %2519 = vmatprep.subr.bf16.mxu0 %v2706_v21  ;;  %2531 = vmatprep.subr.bf16.mxu1 %v2706_v21 }
 0x125   : > { %v2397_v25 = vpop.f32.mrb[0].mxu0  ;;  %v2402_v26 = vpop.f32.mrb[0].mxu1 }
 0x126   : > { %v1043_v28 = vpop.f32.mrb[1].mxu0  ;;  %v1142_v29 = vmax.f32 %v2397_v25, %v2402_v26  ;;  %v1130_v30 = vpop.f32.mrb[1].mxu1  ;;  %v1951_v25 = vld [vmem:[%s3046_s5 + $0xa8] sm:$0xff] }
 0x127   : > { %v1141_v31 = vmax.f32 %v1043_v28, %v1130_v30  ;;  %v1953_v28 = vld [vmem:[%s3046_s5 + $0xb8] sm:$0xff]  ;;  %v2595_v30 = vpack.c.bf16 %v1944_v23, %v1940_v20 }
 0x128   : > { %v1151_v32 = vadd.f32 %v2256_v27, %v1142_v29  ;;  %v2579_v29 = vpack.c.bf16 %v1942_v19, %v1938_v18 }
 0x129   : > { %v1150_v33 = vadd.f32 %v2256_v27, %v1141_v31  ;;  %v1949_v27 = vld [vmem:[%s3046_s5 + $0x98] sm:$0xff]  ;;  %v2581_v31 = vpack.c.bf16 %v1951_v25, %v1947_v24 }
 0x12a   : > { %v1153_v34 = vmax.f32 %v1151_v32, 0.0  ;;  %v2597_v32 = vpack.c.bf16 %v1953_v28, %v1949_v27 }
 0x12b   : > { %v1152_v35 = vmax.f32 %v1150_v33, 0.0  ;;  %v1946_v33 = vld [vmem:[%s3046_s5 + $0x80] sm:$0xff] }
 0x12c   : > { %1160 = vst.msk [vmem:[#allocation2 + $0xa] sm:$0xff] %vm1154_vm2, %v1153_v34  ;;  %v1950_v34 = vld [vmem:[%s3046_s5 + $0xa0] sm:$0xff] }
 0x12d   : > { %1159 = vst.msk [vmem:[#allocation2 + $0x2] sm:$0xff] %vm1154_vm2, %v1152_v35  ;;  %v1948_v35 = vld [vmem:[%s3046_s5 + $0x90] sm:$0xff]  ;;  %v2583_v36 = vpack.c.bf16 %v1950_v34, %v1946_v33 }
 0x134   : > { %v1167_v41 = vld [vmem:[#allocation2 + $0x1] ss:$2 sm:$0xff]  ;;  %v1320_v42 = vld [vmem:[#allocation2 + $0x2] ss:$2 sm:$0xff] }
 0x135   : > { %2412 = vmatmul.mubr.msk.f32.vlgmr.msra.gmra.mrb[2].mxu0 %vm1154_vm2, %v1167_v41  ;;  %2434 = vmatmul.mubr.msk.f32.vlgmr.msra.gmra.mrb[2].mxu1 %vm1154_vm2, %v1320_v42  ;;  %v1165_v49 = vld [vmem:[#allocation2] ss:$2 sm:$0xff]  ;;  %v1541_v56 = vld [vmem:[#allocation2 + $0x3] ss:$2 sm:$0xff] }
 0x136   : > { %2521 = vmatpush3.bf16.msra.mxu0 %v2520_v38  ;;  %2533 = vmatpush3.bf16.msra.mxu1 %v2520_v38  ;;  %v1693_v1 = vld [vmem:[#allocation2 + $0x4] ss:$2 sm:$0xff]  ;;  %v1845_v26 = vld [vmem:[#allocation2 + $0x5] ss:$2 sm:$0xff] }
 0x137   : > { %2522 = vmatprep.subr.bf16.mxu0 %v2706_v21  ;;  %2534 = vmatprep.subr.bf16.mxu1 %v2706_v21  ;;  %v1955_v38 = vld [vmem:[%s3046_s5 + $0xc8] sm:$0xff] }
 0x138   : > { %2422 = vmatprep.mubr.msk.f32.mxu0 %vm2707_vm4, %v2705_v17  ;;  %2444 = vmatprep.mubr.msk.f32.mxu1 %vm2707_vm4, %v2705_v17  ;;  %v2585_v40 = vpack.c.bf16 %v1959_v39, %v1955_v38 }
 0x13a   : > { %2524 = vmatpush3.bf16.msra.mxu0 %v2523_v43  ;;  %2536 = vmatpush3.bf16.msra.mxu1 %v2523_v43  ;;  %v1954_v43 = vld [vmem:[%s3046_s5 + $0xc0] sm:$0xff] }
 0x13b   : > { %2537 = vmatprep.subr.bf16.mxu0 %v2706_v21  ;;  %2543 = vmatprep.subr.bf16.mxu1 %v2706_v21  ;;  %v2587_v48 = vpack.c.bf16 %v1958_v45, %v1954_v43 }
 0x13d   : > { %2423 = vmatmul.mubr.msk.f32.vlgmr.msra.gmra.mrb[2].mxu0 %vm1154_vm2, %v1165_v49  ;;  %2445 = vmatmul.mubr.msk.f32.vlgmr.msra.gmra.mrb[2].mxu1 %vm1154_vm2, %v1167_v41  ;;  %v1957_v41 = vld [vmem:[%s3046_s5 + $0xd8] sm:$0xff] }
 0x13e   : > { %2539 = vmatpush3.bf16.msra.mxu0 %v2538_v46  ;;  %2545 = vmatpush3.bf16.msra.mxu1 %v2538_v46  ;;  %v1956_v46 = vld [vmem:[%s3046_s5 + $0xd0] sm:$0xff] }
 0x13f   : > { %2540 = vmatprep.subr.bf16.mxu0 %v2706_v21  ;;  %2546 = vmatprep.subr.bf16.mxu1 %v2706_v21  ;;  %v2603_v49 = vpack.c.bf16 %v1960_v47, %v1956_v46 }
 0x140   : > { %2455 = vmatprep.mubr.msk.f32.mxu0 %vm2707_vm4, %v2705_v17  ;;  %2466 = vmatprep.mubr.msk.f32.mxu1 %vm2707_vm4, %v2705_v17 }
 0x142   : > { %2542 = vmatpush3.bf16.msra.mxu0 %v2541_v50  ;;  %2548 = vmatpush3.bf16.msra.mxu1 %v2541_v50 }
 0x143   : > { %2549 = vmatprep.subr.bf16.mxu0 %v2706_v21  ;;  %2555 = vmatprep.subr.bf16.mxu1 %v2706_v21 }
 0x145   : > { %2456 = vmatmul.mubr.msk.f32.vlgmr.msra.gmra.mrb[2].mxu0 %vm1154_vm2, %v1320_v42  ;;  %2467 = vmatmul.mubr.msk.f32.vlgmr.msra.gmra.mrb[2].mxu1 %vm1154_vm2, %v1541_v56  ;;  %v1961_v42 = vld [vmem:[%s3046_s5 + $0xf8] sm:$0xff] }
 0x146   : > { %2551 = vmatpush3.bf16.msra.mxu0 %v2550_v53  ;;  %2557 = vmatpush3.bf16.msra.mxu1 %v2550_v53  ;;  %v2601_v44 = vpack.c.bf16 %v1961_v42, %v1957_v41 }
 0x147   : > { %2552 = vmatprep.subr.bf16.mxu0 %v2706_v21  ;;  %2558 = vmatprep.subr.bf16.mxu1 %v2706_v21 }
 0x148   : > { %2477 = vmatprep.mubr.msk.f32.mxu0 %vm2707_vm4, %v2705_v17  ;;  %2488 = vmatprep.mubr.msk.f32.mxu1 %vm2707_vm4, %v2705_v17 }
 0x14a   : > { %2554 = vmatpush3.bf16.msra.mxu0 %v2553_v57  ;;  %2560 = vmatpush3.bf16.msra.mxu1 %v2553_v57 }
 0x14b   : > { %2561 = vmatprep.subr.bf16.mxu0 %v2706_v21  ;;  %2567 = vmatprep.subr.bf16.mxu1 %v2706_v21 }
 0x14d   : > { %2478 = vmatmul.mubr.msk.f32.vlgmr.msra.gmra.mrb[2].mxu0 %vm1154_vm2, %v1541_v56  ;;  %2489 = vmatmul.mubr.msk.f32.vlgmr.msra.gmra.mrb[2].mxu1 %vm1154_vm2, %v1693_v1 }
 0x14e   : > { %2563 = vmatpush3.bf16.msra.mxu0 %v2562_v60  ;;  %2569 = vmatpush3.bf16.msra.mxu1 %v2562_v60  ;;  %v1966_v60 = vsub.s32 0, %v1965_v59 }
 0x14f   : > { %2564 = vmatprep.subr.bf16.mxu0 %v2706_v21  ;;  %2570 = vmatprep.subr.bf16.mxu1 %v2706_v21  ;;  %v2577_v21 = vpack.c.bf16 %v1943_v12, %v1939_v11 }
 0x150   : > { %2499 = vmatprep.mubr.msk.f32.mxu0 %vm2707_vm4, %v2705_v17  ;;  %2510 = vmatprep.mubr.msk.f32.mxu1 %vm2707_vm4, %v2705_v17 }
 0x152   : > { %2566 = vmatpush3.bf16.msra.mxu0 %v2565_v4  ;;  %2572 = vmatpush3.bf16.msra.mxu1 %v2565_v4  ;;  %v1979_v4 = vrot.slane %v1962_v62, %v1978_v0 }
 0x153   : > { %2574 = vmatprep.subr.bf16.mxu0 %v2573_v7  ;;  %2590 = vmatprep.subr.bf16.mxu1 %v2589_v8 }
 0x155   : > { %2500 = vmatmul.mubr.msk.f32.vlgmr.msra.gmra.mrb[2].mxu0 %vm1154_vm2, %v1693_v1  ;;  %2511 = vmatmul.mubr.msk.f32.vlgmr.msra.gmra.mrb[2].mxu1 %vm1154_vm2, %v1845_v26  ;;  %v1967_v1 = vrot.slane %v1962_v62, %v1966_v60 }
 0x156   : > { %2576 = vmatpush1.bf16.msra.mxu0 %v2575_v15  ;;  %2592 = vmatpush1.bf16.msra.mxu1 %v2591_v16 }
 0x157   : > { %2578 = vmatprep.subr.bf16.mxu0 %v2577_v21  ;;  %2594 = vmatprep.subr.bf16.mxu1 %v2593_v22 }
 0x158   : > { %2052 = vmatprep.mubr.f32.mxu0 %v2705_v17  ;;  %2123 = vmatprep.mubr.f32.mxu1 %v2705_v17  ;;  %v1952_v17 = vld [vmem:[%s3046_s5 + $0xb0] sm:$0xff] }
 0x159   : > { %v2599_v37 = vpack.c.bf16 %v1952_v17, %v1948_v35 }
 0x15a   : > { %2580 = vmatpush1.bf16.msra.mxu0 %v2579_v29  ;;  %2596 = vmatpush1.bf16.msra.mxu1 %v2595_v30 }
 0x15b   : > { %2582 = vmatprep.subr.bf16.mxu0 %v2581_v31  ;;  %2598 = vmatprep.subr.bf16.mxu1 %v2597_v32 }
 0x15e   : > { %2584 = vmatpush1.bf16.msra.mxu0 %v2583_v36  ;;  %2600 = vmatpush1.bf16.msra.mxu1 %v2599_v37 }
 0x15f   : > { %2586 = vmatprep.subr.bf16.mxu0 %v2585_v40  ;;  %2602 = vmatprep.subr.bf16.mxu1 %v2601_v44 }
 0x162   : > { %2588 = vmatpush1.bf16.msra.mxu0 %v2587_v48  ;;  %2604 = vmatpush1.bf16.msra.mxu1 %v2603_v49 }
 0x228   : > { %v1839_v50 = vpop.f32.mrb[2].mxu0  ;;  %v1915_v51 = vpop.f32.mrb[2].mxu1 }
 0x229   : > { %v1920_v53 = vmax.f32 %v1839_v50, %v1915_v51  ;;  %v2501_v54 = vpop.f32.mrb[3].mxu0  ;;  %v2512_v55 = vpop.f32.mrb[3].mxu1 }
 0x22b   : > { %v1928_v56 = vadd.f32 %v2267_v52, %v1920_v53 }
 0x22d   : > { %v1929_v57 = vmax.f32 %v1928_v56, 0.0 }
 0x22f   : > { %2268 = vmatmul.mubr.msk.f32.vlgmr.msra.gmra.mrb[4].mxu0 %vm1984_vm5, %v1929_v57  ;;  %2269 = vmatmul.mubr.msk.f32.vlgmr.msra.gmra.mrb[4].mxu1 %vm1984_vm5, %v1929_v57 }
 0x302   : > { %v2054_v5 = vpop.f32.mrb[4].mxu0  ;;  %v2125_v6 = vpop.f32.mrb[4].mxu1 }
 0x303   : > { %v2055_v7 = vadd.f32 %v2054_v5, %v1967_v1  ;;  %v2126_v8 = vadd.f32 %v2125_v6, %v1975_v2  ;;  %v2056_v9 = vpop.f32.mrb[5].mxu0  ;;  %v2127_v10 = vpop.f32.mrb[5].mxu1 }
 0x304   : > { %v2057_v11 = vadd.f32 %v2056_v9, %v1971_v3  ;;  %v2128_v12 = vadd.f32 %v2127_v10, %v1979_v4 }
 0x305   : > { %2130 = vst [vmem:[%s293_s22] sm:$0xff] %v2055_v7  ;;  %2132 = vst [vmem:[%s293_s22 + $0x10] sm:$0xff] %v2126_v8 }
 0x306   : > { %2131 = vst [vmem:[%s293_s22 + $0x8] sm:$0xff] %v2057_v11  ;;  %2133 = vst [vmem:[%s293_s22 + $0x18] sm:$0xff] %v2128_v12 }
 0x307 PF: > { %s18_s24 = sadd.s32 1, %s2700_s24  }
 0x308   : > { %p15_p3 = scmp.ge.s32.totalorder %s18_s24, 4  }
 0x30a   :  { %17 = sbr.rel (!%p15_p3) target bundleno = 1 (0x1), region = 107 }
 0x311   :  { %2155 = vsyncpa [#allocation4], 1 }
 0x312   :  { %2157 = vsyncpa [#allocation4 + $0x1], 1 }

</bundles_post_ra>
